<compile_context>
chip_gen: v6e
topology: v6e:2x2x1
jax: 0.10.0
libtpu: 0.0.40
codegen_flags: <defaults>
</compile_context>

<pallas_src>
import functools

import jax
import jax.numpy as jnp
from jax.experimental import pallas as pl
from jax.experimental.pallas import tpu as pltpu

GAMMA = 0.9
EXT_COEFF = 1.0


def _softplus(x):
    return jnp.maximum(x, 0.0) + jnp.log1p(jnp.exp(-jnp.abs(x)))


def _leaky_relu(x, slope=0.2):
    return jnp.where(x > 0, x, slope * x)


def _elu(x):
    return jnp.where(x > 0, x, jnp.exp(x) - 1.0)


# --------------------------------------------------------------------------- #
# Wrapper-side weight fusion (done once, outside the kernels).
# --------------------------------------------------------------------------- #
def _preprocess(params):
    E = params['wg'].shape[-1]
    He = params['we1'].shape[-1]
    wg, ag, wl, al = params['wg'], params['ag'], params['wl'], params['al']

    # Per-channel fused x-projection [Wg | Wl | Wg@ag^T | Wl@al^T] -> (C, F, 2E+4):
    # the GAT attention scores become 4 extra columns of the single x matmul.
    sg = jnp.einsum('cfe,cae->cfa', wg, ag)
    sl = jnp.einsum('cfe,cae->cfa', wl, al)
    wxa = jnp.concatenate([wg, wl, sg, sl], axis=-1)

    # Fused y_g projection [wu1_i | wu1_j | wv1] -> (E, 6E); bu1 folded into the
    # a_u half (added once per node, not once per edge), bv1 into the val hidden.
    wu1, wv1 = params['wu1'], params['wv1']
    wgp = jnp.concatenate([wu1[:E], wu1[E:2 * E], wv1], axis=-1)
    bgp = jnp.concatenate(
        [params['bu1'], jnp.zeros((1, 2 * E), jnp.float32), params['bv1']], axis=-1)

    # Fused y_l projection [we1_i | we1_j] -> (E, 2He); be1 folded into a_e half.
    we1 = params['we1']
    wlp = jnp.concatenate([we1[:E], we1[E:2 * E]], axis=-1)
    blp = jnp.concatenate([params['be1'], jnp.zeros((1, He), jnp.float32)], axis=-1)

    return dict(
        wxa=wxa, wgp=wgp, bgp=bgp, wlp=wlp, blp=blp,
        wp=we1[2 * E:],                 # (C, He): pi-channel rows of the ext FF
        wu2r=params['wu2'].T,           # (1, 2E)
        we2r=params['we2'].T,           # (1, He)
        wv2=params['wv2'],              # (2E, 1)
        scalars=jnp.concatenate([params['bu2'].reshape(-1),
                                 params['be2'].reshape(-1),
                                 params['bv2'].reshape(-1)]).astype(jnp.float32),
    )


def _vmem_limit_bytes():
    """Derive a safe VMEM limit from the chip (~48 MiB on v7x, <=96 MiB v5e/v6e)."""
    cap = 128 << 20
    try:
        info = pltpu.get_tpu_info()
        cap = int(getattr(info, 'vmem_capacity_bytes', cap))
    except Exception:
        pass
    return int(min(cap - cap // 4, 96 << 20))


def _pick_row_tile(n, cap_rows):
    """Largest multiple-of-8 divisor of n that is <= cap_rows (or n itself)."""
    cap = int(max(1, cap_rows))
    if cap >= n:
        return n
    best = None
    for t in range(8, min(cap, n) + 1, 8):
        if n % t == 0:
            best = t
    return best if best is not None else n


# --------------------------------------------------------------------------- #
# Prologue kernel: per-channel node-level work, grid=(C,).  Runs ONCE per
# channel (not per batch) — removes the (B-1)x redundant MXU / EUP / XLU work.
# --------------------------------------------------------------------------- #
def _node_kernel(E, He,
                 x_ref, adj_ref, wxa_ref, wgp_ref, bgp_ref, wlp_ref, blp_ref,
                 wv2_ref, sc_ref,
                 au_ref, bu_ref, ae_ref, be_ref, vrow_ref, vcol_ref):
    x = x_ref[...]                                     # (N, F)
    adj = adj_ref[...]                                 # (N, N)

    proj = jnp.dot(x, wxa_ref[0], preferred_element_type=jnp.float32)   # (N, 2E+4)
    h_g, h_l = proj[:, :E], proj[:, E:2 * E]
    s_g, s_l = proj[:, 2 * E:2 * E + 2], proj[:, 2 * E + 2:2 * E + 4]

    def gat(h, s):
        # adjacency-masked single-head attention; mask BEFORE the row max so a
        # large non-edge logit can never underflow every edge term (0/0 -> NaN).
        e = _leaky_relu(s[:, 0:1] + jnp.transpose(s[:, 1:2]))           # (N, N)
        e = jnp.where(adj > 0, e, -1e30)
        p = jnp.exp(e - jnp.max(e, axis=-1, keepdims=True)) * adj
        alpha = p / (jnp.sum(p, axis=-1, keepdims=True) + 1e-30)
        return _elu(jnp.dot(alpha, h, preferred_element_type=jnp.float32))

    y_g = gat(h_g, s_g)                                # global GAT output (N, E)
    y_l = gat(h_l, s_l)                                # local  GAT output (N, E)

    gproj = jnp.dot(y_g, wgp_ref[...],
                    preferred_element_type=jnp.float32) + bgp_ref[...]  # (N, 6E)
    au_ref[0] = gproj[:, :2 * E]
    bu_ref[0] = gproj[:, 2 * E:4 * E]
    hv = jnp.maximum(gproj[:, 4 * E:6 * E], 0.0)

    lproj = jnp.dot(y_l, wlp_ref[...],
                    preferred_element_type=jnp.float32) + blp_ref[...]  # (N, 2He)
    ae_ref[0] = lproj[:, :He]
    be_ref[0] = lproj[:, He:2 * He]

    val = -_softplus(jnp.dot(hv, wv2_ref[...],
                             preferred_element_type=jnp.float32) + sc_ref[2])  # (N, 1)
    vcol_ref[0] = val
    vrow_ref[0] = jnp.transpose(val)


# --------------------------------------------------------------------------- #
# Edge kernel: one grid step = one (batch b, channel c, row tile t).
# All heavy (T, N, feat) elementwise work lives here; pi and the output stream
# through VMEM per tile (Pallas double-buffers the blocks).
# --------------------------------------------------------------------------- #
def _edge_kernel(C, cdt,
                 adj_ref, pi_ref, au_ref, bu_ref, ae_ref, be_ref,
                 vrow_ref, vcol_ref, wp_ref, wu2_ref, we2_ref, sc_ref,
                 out_ref):
    adj = adj_ref[...]                                 # (T, N) f32
    bu2, be2 = sc_ref[0], sc_ref[1]                    # SMEM scalars

    # util[i, j] = -softplus( relu(a_u[i] + b_u[j]) . wu2 + bu2 )
    au = au_ref[0].astype(cdt)                         # (T, 2E)
    bu = bu_ref[0].astype(cdt)                         # (N, 2E)
    wu2 = wu2_ref[...].astype(cdt)[None]               # (1, 1, 2E)
    h_u = jnp.maximum(au[:, None, :] + bu[None, :, :], 0.0)        # (T, N, 2E)
    util = -_softplus(jnp.sum(h_u * wu2, axis=-1, dtype=jnp.float32) + bu2)

    # ext[i, j] = -softplus( relu(a_e[i] + b_e[j] + sum_c pi[b,c,j,i]*wp[c]) . we2 + be2 )
    ae = ae_ref[0].astype(cdt)                         # (T, He)
    be = be_ref[0].astype(cdt)                         # (N, He)
    we2 = we2_ref[...].astype(cdt)[None]               # (1, 1, He)
    pre = ae[:, None, :] + be[None, :, :]              # (T, N, He)
    # TODO(synk): for large C (>=8) move this FMA loop onto the MXU as a
    # (T*N, C) @ (C, He) dot; for small C the VPU loop is cheaper.
    for c2 in range(C):
        pi_c = pi_ref[0, c2].astype(cdt)               # (T, N), bf16 over HBM
        pre = pre + pi_c[:, :, None] * wp_ref[c2:c2 + 1, :].astype(cdt)[None]
    h_e = jnp.maximum(pre, 0.0)
    ext = -_softplus(jnp.sum(h_e * we2, axis=-1, dtype=jnp.float32) + be2)

    # f_val = (util + ext_coeff*ext) * adj + gamma*val[j] - val[i]   (mask applied once)
    out_ref[0, 0] = ((util + EXT_COEFF * ext) * adj
                     + GAMMA * vrow_ref[0] - vcol_ref[0])


def gnndis_forward(x, adj, pi, params, *,
                   row_tile_budget_bytes=None,
                   max_rows_per_tile=None,
                   edge_dtype=jnp.float32,      # use jnp.bfloat16 on v6e/v7x
                   pi_dtype=jnp.bfloat16):
    N, F = x.shape
    B, C = pi.shape[0], pi.shape[1]
    E = params['wg'].shape[-1]
    He = params['we1'].shape[-1]

    prep = _preprocess(params)
    vmem_limit = _vmem_limit_bytes()

    # Tile budget accounts for the 2-3 live (T, N, feat) slabs in the edge step.
    if row_tile_budget_bytes is None:
        row_tile_budget_bytes = max(min(vmem_limit // 6, 8 << 20), 1 << 20)
    itemsize = jnp.dtype(edge_dtype).itemsize
    bytes_per_row = N * (2 * (2 * E) + 2 * He) * itemsize + 64 * N
    cap = row_tile_budget_bytes // max(bytes_per_row, 1)
    if max_rows_per_tile is not None:
        cap = min(cap, max_rows_per_tile)
    tile_rows = _pick_row_tile(N, cap)
    n_tiles = N // tile_rows

    # --- prologue: per-channel node-level work (independent of batch) --------
    node_kernel = functools.partial(_node_kernel, E, He)
    full2 = lambda c: (0, 0)
    au, bu, ae, be, vrow, vcol = pl.pallas_call(
        node_kernel,
        out_shape=(
            jax.ShapeDtypeStruct((C, N, 2 * E), jnp.float32),
            jax.ShapeDtypeStruct((C, N, 2 * E), jnp.float32),
            jax.ShapeDtypeStruct((C, N, He), jnp.float32),
            jax.ShapeDtypeStruct((C, N, He), jnp.float32),
            jax.ShapeDtypeStruct((C, 1, N), jnp.float32),
            jax.ShapeDtypeStruct((C, N, 1), jnp.float32),
        ),
        grid=(C,),
        in_specs=[
            pl.BlockSpec((N, F), full2),                                 # x (shared)
            pl.BlockSpec((N, N), full2),                                 # adj (shared)
            pl.BlockSpec((1, F, 2 * E + 4), lambda c: (c, 0, 0)),        # fused GAT weights
            pl.BlockSpec((E, 6 * E), full2),                             # fused y_g proj
            pl.BlockSpec((1, 6 * E), full2),                             # fused y_g bias
            pl.BlockSpec((E, 2 * He), full2),                            # fused y_l proj
            pl.BlockSpec((1, 2 * He), full2),                            # fused y_l bias
            pl.BlockSpec((2 * E, 1), full2),                             # val W2
            pl.BlockSpec(memory_space=pltpu.MemorySpace.SMEM),           # scalars
        ],
        out_specs=[
            pl.BlockSpec((1, N, 2 * E), lambda c: (c, 0, 0)),
            pl.BlockSpec((1, N, 2 * E), lambda c: (c, 0, 0)),
            pl.BlockSpec((1, N, He), lambda c: (c, 0, 0)),
            pl.BlockSpec((1, N, He), lambda c: (c, 0, 0)),
            pl.BlockSpec((1, 1, N), lambda c: (c, 0, 0)),
            pl.BlockSpec((1, N, 1), lambda c: (c, 0, 0)),
        ],
        compiler_params=pltpu.CompilerParams(
            dimension_semantics=("parallel",),
            vmem_limit_bytes=vmem_limit),
    )(x, adj, prep['wxa'], prep['wgp'], prep['bgp'], prep['wlp'], prep['blp'],
      prep['wv2'], prep['scalars'])

    # pi pre-transposed once in the wrapper: edge (i, j) uses pi[b, :, j, i];
    # bf16 over HBM halves the DMA traffic of the only B*C*N^2 input.
    pi_t = jnp.swapaxes(pi, 2, 3).astype(pi_dtype)

    # --- edge kernel: grid-tiled over (batch, channel, row tile) -------------
    edge_kernel = functools.partial(_edge_kernel, C, edge_dtype)
    T = tile_rows
    return pl.pallas_call(
        edge_kernel,
        out_shape=jax.ShapeDtypeStruct((B, C, N, N), jnp.float32),
        grid=(B, C, n_tiles),
        in_specs=[
            pl.BlockSpec((T, N), lambda b, c, t: (t, 0)),                # adj rows
            pl.BlockSpec((1, C, T, N), lambda b, c, t: (b, 0, t, 0)),    # pi^T rows (bf16)
            pl.BlockSpec((1, T, 2 * E), lambda b, c, t: (c, t, 0)),      # a_u rows
            pl.BlockSpec((1, N, 2 * E), lambda b, c, t: (c, 0, 0)),      # b_u (all j)
            pl.BlockSpec((1, T, He), lambda b, c, t: (c, t, 0)),         # a_e rows
            pl.BlockSpec((1, N, He), lambda b, c, t: (c, 0, 0)),         # b_e (all j)
            pl.BlockSpec((1, 1, N), lambda b, c, t: (c, 0, 0)),          # val (row vec)
            pl.BlockSpec((1, T, 1), lambda b, c, t: (c, t, 0)),          # val (col rows)
            pl.BlockSpec((C, He), lambda b, c, t: (0, 0)),               # ext pi-channel rows
            pl.BlockSpec((1, 2 * E), lambda b, c, t: (0, 0)),            # util W2 (row)
            pl.BlockSpec((1, He), lambda b, c, t: (0, 0)),               # ext  W2 (row)
            pl.BlockSpec(memory_space=pltpu.MemorySpace.SMEM),           # bu2/be2/bv2
        ],
        out_specs=pl.BlockSpec((1, 1, T, N), lambda b, c, t: (b, c, t, 0)),
        compiler_params=pltpu.CompilerParams(
            dimension_semantics=("parallel", "parallel", "parallel"),
            vmem_limit_bytes=vmem_limit),
    )(adj, pi_t, au, bu, ae, be, vrow, vcol,
      prep['wp'], prep['wu2r'], prep['we2r'], prep['scalars'])


# --------------------------------------------------------------------------- #
# Pure-JAX reference (same math, untiled) for correctness checking.
# --------------------------------------------------------------------------- #
def reference_forward(x, adj, pi, params, pi_dtype=jnp.bfloat16):
    B, C = pi.shape[0], pi.shape[1]
    E = params['wg'].shape[-1]
    He = params['we1'].shape[-1]
    prep = _preprocess(params)
    # kernel ships pi over HBM as bf16; give the reference the same values
    pi_q = pi.astype(pi_dtype).astype(jnp.float32)
    bu2, be2, bv2 = (prep['scalars'][0], prep['scalars'][1], prep['scalars'][2])

    chans = []
    for c in range(C):
        proj = x @ prep['wxa'][c]
        h_g, h_l = proj[:, :E], proj[:, E:2 * E]
        s_g, s_l = proj[:, 2 * E:2 * E + 2], proj[:, 2 * E + 2:2 * E + 4]

        def gat(h, s):
            e = _leaky_relu(s[:, 0:1] + s[:, 1:2].T)
            e = jnp.where(adj > 0, e, -1e30)
            p = jnp.exp(e - jnp.max(e, axis=-1, keepdims=True)) * adj
            alpha = p / (jnp.sum(p, axis=-1, keepdims=True) + 1e-30)
            return _elu(alpha @ h)

        y_g, y_l = gat(h_g, s_g), gat(h_l, s_l)
        gproj = y_g @ prep['wgp'] + prep['bgp']
        a_u, b_u = gproj[:, :2 * E], gproj[:, 2 * E:4 * E]
        hv = jnp.maximum(gproj[:, 4 * E:], 0.0)
        lproj = y_l @ prep['wlp'] + prep['blp']
        a_e, b_e = lproj[:, :He], lproj[:, He:]
        val = -_softplus(hv @ prep['wv2'] + bv2)                   # (N, 1)

        h_u = jnp.maximum(a_u[:, None, :] + b_u[None, :, :], 0.0)
        util = -_softplus(jnp.sum(h_u * prep['wu2r'][0], axis=-1) + bu2)

        per_b = []
        for b in range(B):
            piT = jnp.transpose(pi_q[b], (0, 2, 1))                # pi[b, c2, j, i]
            pre = a_e[:, None, :] + b_e[None, :, :]
            for c2 in range(C):
                pre = pre + piT[c2][:, :, None] * prep['wp'][c2][None, None, :]
            ext = -_softplus(jnp.sum(jnp.maximum(pre, 0.0) * prep['we2r'][0],
                                     axis=-1) + be2)
            per_b.append((util + EXT_COEFF * ext) * adj + GAMMA * val.T - val)
        chans.append(jnp.stack(per_b, 0))                          # (B, N, N)
    return jnp.stack(chans, 1)                                     # (B, C, N, N)


def init_params(key, F, E, C):
    He = 2 * (E + C)
    ks = jax.random.split(key, 16)
    s = 0.2
    nrm = lambda k, shp: (s * jax.random.normal(k, shp)).astype(jnp.float32)
    return {
        'wg': nrm(ks[0], (C, F, E)),  'ag': nrm(ks[1], (C, 2, E)),
        'wl': nrm(ks[2], (C, F, E)),  'al': nrm(ks[3], (C, 2, E)),
        'wu1': nrm(ks[4], (2 * E, 2 * E)), 'bu1': nrm(ks[5], (1, 2 * E)),
        'wu2': nrm(ks[6], (2 * E, 1)),     'bu2': nrm(ks[7], (1, 1)),
        'we1': nrm(ks[8], (2 * E + C, He)), 'be1': nrm(ks[9], (1, He)),
        'we2': nrm(ks[10], (He, 1)),        'be2': nrm(ks[11], (1, 1)),
        'wv1': nrm(ks[12], (E, 2 * E)),     'bv1': nrm(ks[13], (1, 2 * E)),
        'wv2': nrm(ks[14], (2 * E, 1)),     'bv2': nrm(ks[15], (1, 1)),
    }


if __name__ == "__main__":
    # small shapes: N nodes, F = feature_num + context_num, E = emb_dim,
    # C = output_channel, B = batch
    N, F, E, C, B = 32, 8, 32, 2, 2

    key = jax.random.PRNGKey(0)
    kx, kpi, kp = jax.random.split(key, 3)

    x = jax.random.normal(kx, (N, F), jnp.float32)
    # deterministic ring graph with self-loops (avoids empty attention rows)
    eye = jnp.eye(N, dtype=jnp.float32)
    adj = jnp.clip(eye + jnp.roll(eye, 1, axis=0) + jnp.roll(eye, -1, axis=0), 0.0, 1.0)
    pi = jax.random.uniform(kpi, (B, C, N, N), jnp.float32)
    params = init_params(kp, F, E, C)

    # max_rows_per_tile=16 -> two row tiles, exercising the grid-tiled edge path
    out = gnndis_forward(x, adj, pi, params, max_rows_per_tile=16)
    out = jax.block_until_ready(out)

    ref = reference_forward(x, adj, pi, params)
    assert out.shape == (B, C, N, N), out.shape
    assert bool(jnp.all(jnp.isfinite(out)))
    max_err = float(jnp.max(jnp.abs(out - ref)))
    assert max_err < 1e-2, f"max abs err {max_err}"

    print("KERNEL_OK")
</pallas_src>

<mosaic_0001>
module attributes {stable_mosaic.version = 11 : i64} {
  func.func @_node_kernel(%arg0: i32, %arg1: memref<32x8xf32, #tpu.memory_space<vmem>>, %arg2: memref<32x32xf32, #tpu.memory_space<vmem>>, %arg3: memref<1x8x68xf32, #tpu.memory_space<vmem>>, %arg4: memref<32x192xf32, #tpu.memory_space<vmem>>, %arg5: memref<1x192xf32, #tpu.memory_space<vmem>>, %arg6: memref<32x136xf32, #tpu.memory_space<vmem>>, %arg7: memref<1x136xf32, #tpu.memory_space<vmem>>, %arg8: memref<64x1xf32, #tpu.memory_space<vmem>>, %arg9: memref<3xf32, #tpu.memory_space<smem>>, %arg10: memref<1x32x64xf32, #tpu.memory_space<vmem>>, %arg11: memref<1x32x64xf32, #tpu.memory_space<vmem>>, %arg12: memref<1x32x68xf32, #tpu.memory_space<vmem>>, %arg13: memref<1x32x68xf32, #tpu.memory_space<vmem>>, %arg14: memref<1x1x32xf32, #tpu.memory_space<vmem>>, %arg15: memref<1x32x1xf32, #tpu.memory_space<vmem>>) attributes {dimension_semantics = [#tpu.dimension_semantics<parallel>], iteration_bounds = array<i64: 2>, scalar_prefetch = 0 : i64, scratch_operands = 0 : i64, tpu.core_type = #tpu.core_type<tc>, window_params = [{pipeline_mode = #tpu.pipeline_mode<synchronous>, transform_indices = @transform_0, window_bounds = array<i64: 32, 8>}, {pipeline_mode = #tpu.pipeline_mode<synchronous>, transform_indices = @transform_1, window_bounds = array<i64: 32, 32>}, {transform_indices = @transform_2, window_bounds = array<i64: 1, 8, 68>}, {pipeline_mode = #tpu.pipeline_mode<synchronous>, transform_indices = @transform_3, window_bounds = array<i64: 32, 192>}, {pipeline_mode = #tpu.pipeline_mode<synchronous>, transform_indices = @transform_4, window_bounds = array<i64: 1, 192>}, {pipeline_mode = #tpu.pipeline_mode<synchronous>, transform_indices = @transform_5, window_bounds = array<i64: 32, 136>}, {pipeline_mode = #tpu.pipeline_mode<synchronous>, transform_indices = @transform_6, window_bounds = array<i64: 1, 136>}, {pipeline_mode = #tpu.pipeline_mode<synchronous>, transform_indices = @transform_7, window_bounds = array<i64: 64, 1>}, {transform_indices = @transform_8, window_bounds = array<i64: 3>}, {transform_indices = @transform_9, window_bounds = array<i64: 1, 32, 64>}, {transform_indices = @transform_10, window_bounds = array<i64: 1, 32, 64>}, {transform_indices = @transform_11, window_bounds = array<i64: 1, 32, 68>}, {transform_indices = @transform_12, window_bounds = array<i64: 1, 32, 68>}, {transform_indices = @transform_13, window_bounds = array<i64: 1, 1, 32>}, {transform_indices = @transform_14, window_bounds = array<i64: 1, 32, 1>}]} {
    %c0 = arith.constant 0 : index
    %c0_0 = arith.constant 0 : index
    %0 = vector.load %arg1[%c0, %c0_0] : memref<32x8xf32, #tpu.memory_space<vmem>>, vector<32x8xf32>
    %c0_1 = arith.constant 0 : index
    %c0_2 = arith.constant 0 : index
    %1 = vector.load %arg2[%c0_1, %c0_2] : memref<32x32xf32, #tpu.memory_space<vmem>>, vector<32x32xf32>
    %c0_3 = arith.constant 0 : index
    %c0_4 = arith.constant 0 : index
    %c0_5 = arith.constant 0 : index
    %2 = vector.load %arg3[%c0_3, %c0_4, %c0_5] : memref<1x8x68xf32, #tpu.memory_space<vmem>>, vector<1x8x68xf32>
    %3 = vector.shape_cast %2 : vector<1x8x68xf32> to vector<8x68xf32>
    %cst = arith.constant dense<0.000000e+00> : vector<32x68xf32>
    %4 = tpu.matmul %0, %3, %cst {dimension_numbers = #tpu.dot_dimension_numbers<[1], [0], [0], [1], [0, 0, 1, 1], [], []>} : vector<32x8xf32>, vector<8x68xf32>, vector<32x68xf32> -> vector<32x68xf32>
    %5 = vector.extract_strided_slice %4 {offsets = [0, 0], sizes = [32, 32], strides = [1, 1]} : vector<32x68xf32> to vector<32x32xf32>
    %6 = vector.extract_strided_slice %4 {offsets = [0, 32], sizes = [32, 32], strides = [1, 1]} : vector<32x68xf32> to vector<32x32xf32>
    %7 = vector.extract_strided_slice %4 {offsets = [0, 64], sizes = [32, 2], strides = [1, 1]} : vector<32x68xf32> to vector<32x2xf32>
    %8 = vector.extract_strided_slice %4 {offsets = [0, 66], sizes = [32, 2], strides = [1, 1]} : vector<32x68xf32> to vector<32x2xf32>
    %9 = vector.extract_strided_slice %7 {offsets = [0, 0], sizes = [32, 1], strides = [1, 1]} : vector<32x2xf32> to vector<32x1xf32>
    %10 = vector.extract_strided_slice %7 {offsets = [0, 1], sizes = [32, 1], strides = [1, 1]} : vector<32x2xf32> to vector<32x1xf32>
    %11 = tpu.transpose %10, [1, 0] : vector<32x1xf32> -> vector<1x32xf32>
    %12 = vector.broadcast %9 : vector<32x1xf32> to vector<32x32xf32>
    %13 = vector.broadcast %11 : vector<1x32xf32> to vector<32x32xf32>
    %14 = arith.addf %12, %13 : vector<32x32xf32>
    %cst_6 = arith.constant 0.000000e+00 : f32
    %15 = vector.broadcast %cst_6 : f32 to vector<32x32xf32>
    %16 = arith.cmpf ogt, %14, %15 : vector<32x32xf32>
    %cst_7 = arith.constant 2.000000e-01 : f32
    %17 = vector.broadcast %cst_7 : f32 to vector<32x32xf32>
    %18 = arith.mulf %17, %14 : vector<32x32xf32>
    %19 = arith.select %16, %14, %18 : vector<32x32xi1>, vector<32x32xf32>
    %cst_8 = arith.constant 0.000000e+00 : f32
    %20 = vector.broadcast %cst_8 : f32 to vector<32x32xf32>
    %21 = arith.cmpf ogt, %1, %20 : vector<32x32xf32>
    %cst_9 = arith.constant -1.000000e+30 : f32
    %22 = vector.broadcast %cst_9 : f32 to vector<32x32xf32>
    %23 = arith.select %21, %19, %22 : vector<32x32xi1>, vector<32x32xf32>
    %cst_10 = arith.constant dense<0xFF800000> : vector<32xf32>
    %24 = vector.multi_reduction <maximumf>, %23, %cst_10 [1] : vector<32x32xf32> to vector<32xf32>
    %25 = vector.shape_cast %24 : vector<32xf32> to vector<32x1xf32>
    %26 = vector.broadcast %25 : vector<32x1xf32> to vector<32x32xf32>
    %27 = arith.subf %23, %26 : vector<32x32xf32>
    %28 = math.exp %27 : vector<32x32xf32>
    %29 = arith.mulf %28, %1 : vector<32x32xf32>
    %cst_11 = arith.constant dense<0.000000e+00> : vector<32xf32>
    %30 = vector.multi_reduction <add>, %29, %cst_11 [1] : vector<32x32xf32> to vector<32xf32>
    %31 = vector.shape_cast %30 : vector<32xf32> to vector<32x1xf32>
    %cst_12 = arith.constant 1.000000e-30 : f32
    %32 = vector.broadcast %cst_12 : f32 to vector<32x1xf32>
    %33 = arith.addf %31, %32 : vector<32x1xf32>
    %34 = vector.broadcast %33 : vector<32x1xf32> to vector<32x32xf32>
    %35 = arith.divf %29, %34 : vector<32x32xf32>
    %cst_13 = arith.constant dense<0.000000e+00> : vector<32x32xf32>
    %36 = tpu.matmul %35, %5, %cst_13 {dimension_numbers = #tpu.dot_dimension_numbers<[1], [0], [0], [1], [0, 0, 1, 1], [], []>} : vector<32x32xf32>, vector<32x32xf32>, vector<32x32xf32> -> vector<32x32xf32>
    %cst_14 = arith.constant 0.000000e+00 : f32
    %37 = vector.broadcast %cst_14 : f32 to vector<32x32xf32>
    %38 = arith.cmpf ogt, %36, %37 : vector<32x32xf32>
    %39 = math.exp %36 : vector<32x32xf32>
    %cst_15 = arith.constant 1.000000e+00 : f32
    %40 = vector.broadcast %cst_15 : f32 to vector<32x32xf32>
    %41 = arith.subf %39, %40 : vector<32x32xf32>
    %42 = arith.select %38, %36, %41 : vector<32x32xi1>, vector<32x32xf32>
    %43 = vector.extract_strided_slice %8 {offsets = [0, 0], sizes = [32, 1], strides = [1, 1]} : vector<32x2xf32> to vector<32x1xf32>
    %44 = vector.extract_strided_slice %8 {offsets = [0, 1], sizes = [32, 1], strides = [1, 1]} : vector<32x2xf32> to vector<32x1xf32>
    %45 = tpu.transpose %44, [1, 0] : vector<32x1xf32> -> vector<1x32xf32>
    %46 = vector.broadcast %43 : vector<32x1xf32> to vector<32x32xf32>
    %47 = vector.broadcast %45 : vector<1x32xf32> to vector<32x32xf32>
    %48 = arith.addf %46, %47 : vector<32x32xf32>
    %cst_16 = arith.constant 0.000000e+00 : f32
    %49 = vector.broadcast %cst_16 : f32 to vector<32x32xf32>
    %50 = arith.cmpf ogt, %48, %49 : vector<32x32xf32>
    %cst_17 = arith.constant 2.000000e-01 : f32
    %51 = vector.broadcast %cst_17 : f32 to vector<32x32xf32>
    %52 = arith.mulf %51, %48 : vector<32x32xf32>
    %53 = arith.select %50, %48, %52 : vector<32x32xi1>, vector<32x32xf32>
    %cst_18 = arith.constant 0.000000e+00 : f32
    %54 = vector.broadcast %cst_18 : f32 to vector<32x32xf32>
    %55 = arith.cmpf ogt, %1, %54 : vector<32x32xf32>
    %cst_19 = arith.constant -1.000000e+30 : f32
    %56 = vector.broadcast %cst_19 : f32 to vector<32x32xf32>
    %57 = arith.select %55, %53, %56 : vector<32x32xi1>, vector<32x32xf32>
    %cst_20 = arith.constant dense<0xFF800000> : vector<32xf32>
    %58 = vector.multi_reduction <maximumf>, %57, %cst_20 [1] : vector<32x32xf32> to vector<32xf32>
    %59 = vector.shape_cast %58 : vector<32xf32> to vector<32x1xf32>
    %60 = vector.broadcast %59 : vector<32x1xf32> to vector<32x32xf32>
    %61 = arith.subf %57, %60 : vector<32x32xf32>
    %62 = math.exp %61 : vector<32x32xf32>
    %63 = arith.mulf %62, %1 : vector<32x32xf32>
    %cst_21 = arith.constant dense<0.000000e+00> : vector<32xf32>
    %64 = vector.multi_reduction <add>, %63, %cst_21 [1] : vector<32x32xf32> to vector<32xf32>
    %65 = vector.shape_cast %64 : vector<32xf32> to vector<32x1xf32>
    %cst_22 = arith.constant 1.000000e-30 : f32
    %66 = vector.broadcast %cst_22 : f32 to vector<32x1xf32>
    %67 = arith.addf %65, %66 : vector<32x1xf32>
    %68 = vector.broadcast %67 : vector<32x1xf32> to vector<32x32xf32>
    %69 = arith.divf %63, %68 : vector<32x32xf32>
    %cst_23 = arith.constant dense<0.000000e+00> : vector<32x32xf32>
    %70 = tpu.matmul %69, %6, %cst_23 {dimension_numbers = #tpu.dot_dimension_numbers<[1], [0], [0], [1], [0, 0, 1, 1], [], []>} : vector<32x32xf32>, vector<32x32xf32>, vector<32x32xf32> -> vector<32x32xf32>
    %cst_24 = arith.constant 0.000000e+00 : f32
    %71 = vector.broadcast %cst_24 : f32 to vector<32x32xf32>
    %72 = arith.cmpf ogt, %70, %71 : vector<32x32xf32>
    %73 = math.exp %70 : vector<32x32xf32>
    %cst_25 = arith.constant 1.000000e+00 : f32
    %74 = vector.broadcast %cst_25 : f32 to vector<32x32xf32>
    %75 = arith.subf %73, %74 : vector<32x32xf32>
    %76 = arith.select %72, %70, %75 : vector<32x32xi1>, vector<32x32xf32>
    %c0_26 = arith.constant 0 : index
    %c0_27 = arith.constant 0 : index
    %77 = vector.load %arg4[%c0_26, %c0_27] : memref<32x192xf32, #tpu.memory_space<vmem>>, vector<32x192xf32>
    %cst_28 = arith.constant dense<0.000000e+00> : vector<32x192xf32>
    %78 = tpu.matmul %42, %77, %cst_28 {dimension_numbers = #tpu.dot_dimension_numbers<[1], [0], [0], [1], [0, 0, 1, 1], [], []>} : vector<32x32xf32>, vector<32x192xf32>, vector<32x192xf32> -> vector<32x192xf32>
    %c0_29 = arith.constant 0 : index
    %c0_30 = arith.constant 0 : index
    %79 = vector.load %arg5[%c0_29, %c0_30] : memref<1x192xf32, #tpu.memory_space<vmem>>, vector<1x192xf32>
    %80 = vector.broadcast %79 : vector<1x192xf32> to vector<32x192xf32>
    %81 = arith.addf %78, %80 : vector<32x192xf32>
    %82 = vector.extract_strided_slice %81 {offsets = [0, 0], sizes = [32, 64], strides = [1, 1]} : vector<32x192xf32> to vector<32x64xf32>
    %c0_31 = arith.constant 0 : index
    %c0_32 = arith.constant 0 : index
    %c0_33 = arith.constant 0 : index
    %83 = vector.load %arg10[%c0_31, %c0_32, %c0_33] : memref<1x32x64xf32, #tpu.memory_space<vmem>>, vector<1x32x64xf32>
    %84 = vector.shape_cast %83 : vector<1x32x64xf32> to vector<32x64xf32>
    %85 = vector.shape_cast %82 : vector<32x64xf32> to vector<1x32x64xf32>
    tpu.vector_store %arg10[%c0_31, %c0_32, %c0_33], %85 {strides = array<i32>} : memref<1x32x64xf32, #tpu.memory_space<vmem>>, vector<1x32x64xf32>,
    %86 = vector.extract_strided_slice %81 {offsets = [0, 64], sizes = [32, 64], strides = [1, 1]} : vector<32x192xf32> to vector<32x64xf32>
    %c0_34 = arith.constant 0 : index
    %c0_35 = arith.constant 0 : index
    %c0_36 = arith.constant 0 : index
    %87 = vector.load %arg11[%c0_34, %c0_35, %c0_36] : memref<1x32x64xf32, #tpu.memory_space<vmem>>, vector<1x32x64xf32>
    %88 = vector.shape_cast %87 : vector<1x32x64xf32> to vector<32x64xf32>
    %89 = vector.shape_cast %86 : vector<32x64xf32> to vector<1x32x64xf32>
    tpu.vector_store %arg11[%c0_34, %c0_35, %c0_36], %89 {strides = array<i32>} : memref<1x32x64xf32, #tpu.memory_space<vmem>>, vector<1x32x64xf32>,
    %90 = vector.extract_strided_slice %81 {offsets = [0, 128], sizes = [32, 64], strides = [1, 1]} : vector<32x192xf32> to vector<32x64xf32>
    %cst_37 = arith.constant 0.000000e+00 : f32
    %91 = vector.broadcast %cst_37 : f32 to vector<32x64xf32>
    %92 = arith.maximumf %90, %91 : vector<32x64xf32>
    %c0_38 = arith.constant 0 : index
    %c0_39 = arith.constant 0 : index
    %93 = vector.load %arg6[%c0_38, %c0_39] : memref<32x136xf32, #tpu.memory_space<vmem>>, vector<32x136xf32>
    %cst_40 = arith.constant dense<0.000000e+00> : vector<32x136xf32>
    %94 = tpu.matmul %76, %93, %cst_40 {dimension_numbers = #tpu.dot_dimension_numbers<[1], [0], [0], [1], [0, 0, 1, 1], [], []>} : vector<32x32xf32>, vector<32x136xf32>, vector<32x136xf32> -> vector<32x136xf32>
    %c0_41 = arith.constant 0 : index
    %c0_42 = arith.constant 0 : index
    %95 = vector.load %arg7[%c0_41, %c0_42] : memref<1x136xf32, #tpu.memory_space<vmem>>, vector<1x136xf32>
    %96 = vector.broadcast %95 : vector<1x136xf32> to vector<32x136xf32>
    %97 = arith.addf %94, %96 : vector<32x136xf32>
    %98 = vector.extract_strided_slice %97 {offsets = [0, 0], sizes = [32, 68], strides = [1, 1]} : vector<32x136xf32> to vector<32x68xf32>
    %c0_43 = arith.constant 0 : index
    %c0_44 = arith.constant 0 : index
    %c0_45 = arith.constant 0 : index
    %99 = vector.load %arg12[%c0_43, %c0_44, %c0_45] : memref<1x32x68xf32, #tpu.memory_space<vmem>>, vector<1x32x68xf32>
    %100 = vector.shape_cast %99 : vector<1x32x68xf32> to vector<32x68xf32>
    %101 = vector.shape_cast %98 : vector<32x68xf32> to vector<1x32x68xf32>
    tpu.vector_store %arg12[%c0_43, %c0_44, %c0_45], %101 {strides = array<i32>} : memref<1x32x68xf32, #tpu.memory_space<vmem>>, vector<1x32x68xf32>,
    %102 = vector.extract_strided_slice %97 {offsets = [0, 68], sizes = [32, 68], strides = [1, 1]} : vector<32x136xf32> to vector<32x68xf32>
    %c0_46 = arith.constant 0 : index
    %c0_47 = arith.constant 0 : index
    %c0_48 = arith.constant 0 : index
    %103 = vector.load %arg13[%c0_46, %c0_47, %c0_48] : memref<1x32x68xf32, #tpu.memory_space<vmem>>, vector<1x32x68xf32>
    %104 = vector.shape_cast %103 : vector<1x32x68xf32> to vector<32x68xf32>
    %105 = vector.shape_cast %102 : vector<32x68xf32> to vector<1x32x68xf32>
    tpu.vector_store %arg13[%c0_46, %c0_47, %c0_48], %105 {strides = array<i32>} : memref<1x32x68xf32, #tpu.memory_space<vmem>>, vector<1x32x68xf32>,
    %c0_49 = arith.constant 0 : index
    %c0_50 = arith.constant 0 : index
    %106 = vector.load %arg8[%c0_49, %c0_50] : memref<64x1xf32, #tpu.memory_space<vmem>>, vector<64x1xf32>
    %cst_51 = arith.constant dense<0.000000e+00> : vector<32x1xf32>
    %107 = tpu.matmul %92, %106, %cst_51 {dimension_numbers = #tpu.dot_dimension_numbers<[1], [0], [0], [1], [0, 0, 1, 1], [], []>} : vector<32x64xf32>, vector<64x1xf32>, vector<32x1xf32> -> vector<32x1xf32>
    %c2 = arith.constant 2 : index
    %108 = memref.load %arg9[%c2] : memref<3xf32, #tpu.memory_space<smem>>
    %109 = vector.broadcast %108 : f32 to vector<32x1xf32>
    %110 = arith.addf %107, %109 : vector<32x1xf32>
    %cst_52 = arith.constant 0.000000e+00 : f32
    %111 = vector.broadcast %cst_52 : f32 to vector<32x1xf32>
    %112 = arith.maximumf %110, %111 : vector<32x1xf32>
    %113 = math.absf %110 : vector<32x1xf32>
    %cst_53 = arith.constant 0.000000e+00 : f32
    %114 = vector.broadcast %cst_53 : f32 to vector<32x1xf32>
    %115 = arith.subf %114, %113 : vector<32x1xf32>
    %116 = math.exp %115 : vector<32x1xf32>
    %117 = math.log1p %116 : vector<32x1xf32>
    %118 = arith.addf %112, %117 : vector<32x1xf32>
    %cst_54 = arith.constant 0.000000e+00 : f32
    %119 = vector.broadcast %cst_54 : f32 to vector<32x1xf32>
    %120 = arith.subf %119, %118 : vector<32x1xf32>
    %c0_55 = arith.constant 0 : index
    %c0_56 = arith.constant 0 : index
    %c0_57 = arith.constant 0 : index
    %121 = vector.load %arg15[%c0_55, %c0_56, %c0_57] : memref<1x32x1xf32, #tpu.memory_space<vmem>>, vector<1x32x1xf32>
    %122 = vector.shape_cast %121 : vector<1x32x1xf32> to vector<32x1xf32>
    %123 = vector.shape_cast %120 : vector<32x1xf32> to vector<1x32x1xf32>
    tpu.vector_store %arg15[%c0_55, %c0_56, %c0_57], %123 {strides = array<i32>} : memref<1x32x1xf32, #tpu.memory_space<vmem>>, vector<1x32x1xf32>,
    %124 = tpu.transpose %120, [1, 0] : vector<32x1xf32> -> vector<1x32xf32>
    %c0_58 = arith.constant 0 : index
    %c0_59 = arith.constant 0 : index
    %c0_60 = arith.constant 0 : index
    %125 = vector.load %arg14[%c0_58, %c0_59, %c0_60] : memref<1x1x32xf32, #tpu.memory_space<vmem>>, vector<1x1x32xf32>
    %126 = vector.shape_cast %125 : vector<1x1x32xf32> to vector<1x32xf32>
    %127 = vector.shape_cast %124 : vector<1x32xf32> to vector<1x1x32xf32>
    tpu.vector_store %arg14[%c0_58, %c0_59, %c0_60], %127 {strides = array<i32>} : memref<1x1x32xf32, #tpu.memory_space<vmem>>, vector<1x1x32xf32>,
    return
  }
  func.func @transform_0(%arg0: i32) -> (i32, i32) {
    %c0_i32 = arith.constant 0 : i32
    %c0_i32_0 = arith.constant 0 : i32
    %c0_i32_1 = arith.constant 0 : i32
    return %c0_i32, %c0_i32_0 : i32, i32
  }
  func.func @transform_1(%arg0: i32) -> (i32, i32) {
    %c0_i32 = arith.constant 0 : i32
    %c0_i32_0 = arith.constant 0 : i32
    %c0_i32_1 = arith.constant 0 : i32
    return %c0_i32, %c0_i32_0 : i32, i32
  }
  func.func @transform_2(%arg0: i32) -> (i32, i32, i32) {
    %c0_i32 = arith.constant 0 : i32
    %c0_i32_0 = arith.constant 0 : i32
    %c0_i32_1 = arith.constant 0 : i32
    return %arg0, %c0_i32, %c0_i32_0 : i32, i32, i32
  }
  func.func @transform_3(%arg0: i32) -> (i32, i32) {
    %c0_i32 = arith.constant 0 : i32
    %c0_i32_0 = arith.constant 0 : i32
    %c0_i32_1 = arith.constant 0 : i32
    return %c0_i32, %c0_i32_0 : i32, i32
  }
  func.func @transform_4(%arg0: i32) -> (i32, i32) {
    %c0_i32 = arith.constant 0 : i32
    %c0_i32_0 = arith.constant 0 : i32
    %c0_i32_1 = arith.constant 0 : i32
    return %c0_i32, %c0_i32_0 : i32, i32
  }
  func.func @transform_5(%arg0: i32) -> (i32, i32) {
    %c0_i32 = arith.constant 0 : i32
    %c0_i32_0 = arith.constant 0 : i32
    %c0_i32_1 = arith.constant 0 : i32
    return %c0_i32, %c0_i32_0 : i32, i32
  }
  func.func @transform_6(%arg0: i32) -> (i32, i32) {
    %c0_i32 = arith.constant 0 : i32
    %c0_i32_0 = arith.constant 0 : i32
    %c0_i32_1 = arith.constant 0 : i32
    return %c0_i32, %c0_i32_0 : i32, i32
  }
  func.func @transform_7(%arg0: i32) -> (i32, i32) {
    %c0_i32 = arith.constant 0 : i32
    %c0_i32_0 = arith.constant 0 : i32
    %c0_i32_1 = arith.constant 0 : i32
    return %c0_i32, %c0_i32_0 : i32, i32
  }
  func.func @transform_8(%arg0: i32) -> i32 {
    %c0_i32 = arith.constant 0 : i32
    %c0_i32_0 = arith.constant 0 : i32
    return %c0_i32 : i32
  }
  func.func @transform_9(%arg0: i32) -> (i32, i32, i32) {
    %c0_i32 = arith.constant 0 : i32
    %c0_i32_0 = arith.constant 0 : i32
    %c0_i32_1 = arith.constant 0 : i32
    return %arg0, %c0_i32, %c0_i32_0 : i32, i32, i32
  }
  func.func @transform_10(%arg0: i32) -> (i32, i32, i32) {
    %c0_i32 = arith.constant 0 : i32
    %c0_i32_0 = arith.constant 0 : i32
    %c0_i32_1 = arith.constant 0 : i32
    return %arg0, %c0_i32, %c0_i32_0 : i32, i32, i32
  }
  func.func @transform_11(%arg0: i32) -> (i32, i32, i32) {
    %c0_i32 = arith.constant 0 : i32
    %c0_i32_0 = arith.constant 0 : i32
    %c0_i32_1 = arith.constant 0 : i32
    return %arg0, %c0_i32, %c0_i32_0 : i32, i32, i32
  }
  func.func @transform_12(%arg0: i32) -> (i32, i32, i32) {
    %c0_i32 = arith.constant 0 : i32
    %c0_i32_0 = arith.constant 0 : i32
    %c0_i32_1 = arith.constant 0 : i32
    return %arg0, %c0_i32, %c0_i32_0 : i32, i32, i32
  }
  func.func @transform_13(%arg0: i32) -> (i32, i32, i32) {
    %c0_i32 = arith.constant 0 : i32
    %c0_i32_0 = arith.constant 0 : i32
    %c0_i32_1 = arith.constant 0 : i32
    return %arg0, %c0_i32, %c0_i32_0 : i32, i32, i32
  }
  func.func @transform_14(%arg0: i32) -> (i32, i32, i32) {
    %c0_i32 = arith.constant 0 : i32
    %c0_i32_0 = arith.constant 0 : i32
    %c0_i32_1 = arith.constant 0 : i32
    return %arg0, %c0_i32, %c0_i32_0 : i32, i32, i32
  }
}

</mosaic_0001>

<bundles_post_ra>
// kernel: tpu_custom_call.1
= control target key start
LH: loop header
LB: loop body
LE: loop exit
PB: predicated region body
PF: predicated region fallthrough
CT: control target
= control target key end

     0   :  { %s3468_s0 = inlined_call_operand.vmem [shape: f32[32,8], index: 0, kind: input, shape index: {}]   ;;  %s3469_s1 = inlined_call_operand.vmem [shape: f32[32,32], index: 1, kind: input, shape index: {}]   ;;  %s3470_s2 = inlined_call_operand.hbm [shape: f32[2,8,68], index: 2, kind: input, shape index: {}]   ;;  %s3471_s3 = inlined_call_operand.vmem [shape: f32[32,192], index: 3, kind: input, shape index: {}]   ;;  %s3472_s4 = inlined_call_operand.vmem [shape: f32[1,192], index: 4, kind: input, shape index: {}]   ;;  %s3473_s5 = inlined_call_operand.hbm [shape: f32[32,136], index: 5, kind: input, shape index: {}]   ;;  %s3474_s6 = inlined_call_operand.vmem [shape: f32[1,136], index: 6, kind: input, shape index: {}]   ;;  %s3475_s7 = inlined_call_operand.vmem [shape: f32[64,1], index: 7, kind: input, shape index: {}]   ;;  %s3476_s8 = inlined_call_operand.vmem [shape: f32[3], index: 8, kind: input, shape index: {}]   ;;  %s3477_s9 = inlined_call_operand.hbm [shape: f32[2,32,64], index: 9, kind: output, shape index: {0}]   ;;  %s3478_s10 = inlined_call_operand.hbm [shape: f32[2,32,64], index: 10, kind: output, shape index: {1}]   ;;  %s3479_s11 = inlined_call_operand.hbm [shape: f32[2,32,68], index: 11, kind: output, shape index: {2}]   ;;  %s3480_s12 = inlined_call_operand.hbm [shape: f32[2,32,68], index: 12, kind: output, shape index: {3}]   ;;  %s3481_s13 = inlined_call_operand.hbm [shape: f32[2,1,32], index: 13, kind: output, shape index: {4}]   ;;  %s3482_s14 = inlined_call_operand.vmem [shape: f32[2,32,1], index: 14, kind: output, shape index: {5}]  }
   0x1   :  { %3501 = sst [smem:[#allocation28_spill]] %s3468_s0 }
   0x2   :  { %3502 = sst [smem:[#allocation29_spill]] %s3469_s1 }
   0x3   :  { %3503 = sst [smem:[#allocation30_spill]] %s3473_s5 }
   0x4   :  { %3504 = sst [smem:[#allocation31_spill]] %s3476_s8 }
   0x5   :  { %3505 = sst [smem:[#allocation32_spill]] %s3481_s13 }
   0x6   :  { %20 = vsyncpa [#allocation3], 0 }
   0x7   :  { %22 = vsyncpa [#allocation3 + $0x1], 0 }
   0x8   :  { %23 = vsyncpa [#allocation7], 0 }
   0x9   :  { %24 = vsyncpa [#allocation5], 0 }
   0xa   :  { %25 = vsyncpa [#allocation4], 0 }
   0xb   :  { %27 = vsyncpa [#allocation4 + $0x1], 0 }
   0xc   :  { %28 = vsyncpa [#allocation11], 0 }
   0xd   :  { %30 = vsyncpa [#allocation11 + $0x1], 0 }
   0xe   :  { %31 = vsyncpa [#allocation14], 0 }
   0xf   :  { %33 = vsyncpa [#allocation14 + $0x1], 0  ;;  %s2749_s29 = smov 0   ;;  %s2751_s30 = smov 0  }
  0x10   :  { %s2753_s15 = smov 0   ;;  %s2755_s16 = smov 0  }
  0x11 LB: > { %3506 = sst [smem:[#allocation22_spill]] %s2640_s29  ;;  %s2770_s17 = sadd.s32 4294967295, %s2652_s16   ;;  %s2652_s16 = sphi %s2755_s16, %s3541_s16   ;;  %s2648_s15 = sphi %s2753_s15, %s3543_s15   ;;  %s2644_s30 = sphi %s2751_s30, %s3545_s30   ;;  %s2640_s29 = sphi %s2749_s29, %s3544_s29  }
  0x12   : > { %3507 = sst [smem:[#allocation23_spill]] %s2648_s15  ;;  %s3483_s18 = sadd.s32 4294967294, %s2652_s16  }
  0x13   : > { %3508 = sst [smem:[#allocation24_spill]] %s2652_s16  ;;  %p101_p0 = scmp.ne.s32.totalorder %s2644_s30, %s2640_s29 }
  0x14   : > { %p3484_p1 = scmp.eq.s32.totalorder %s2770_s17, 0  ;;  %p257_p3 = scmp.eq.s32.totalorder %s3483_s18, 1 }
  0x15   : > { %p2056_p5 = scmp.ge.s32.totalorder %s2652_s16, 1  ;;  %p394_p7 = scmp.lt.s32.totalorder %s2652_s16, 3 }
  0x16   : > { %p2781_p4 = por %p3484_p1, %p101_p0  ;;  %p2786_p6 = por %p257_p3, %p101_p0 }
  0x17   : > { %p2791_p8 = pnand %p2056_p5, %p394_p7  ;;  %s2654_s22 = smov [#allocation6]  }
  0x18   : > { %s3509_s19 = scalar_select %p2781_p4, 1, 0 }
  0x19   : > { %s3510_s20 = scalar_select %p2786_p6, 1, 0 }
  0x1a   : > { %s3512_s21 = scalar_select %p2791_p8, 1, 0 }
  0x1b   : > { %3511 = sst [smem:[#allocation25_spill]] %s3510_s20  ;;  %s418_s23 = sshll.u32 %s2654_s22, 4  ;;  %s419_s23 = int_to_ptr.vmem [resolvable:$true] %s418_s23 }
  0x1c   : > { %p2252_p9 = pneg %p2791_p8  ;;  %s3513_s8 = sld [smem:[#allocation31_spill]] }
  0x1d   : > { %s2410_s28 = scalar_lea.vmem %s419_s23, 1024  ;;  %p2418_p5 = scmp.lt.s32.totalorder %s419_s23, %s419_s23 }
  0x1e   : > { %p2803_p11 = pnand %p2252_p9, %p3484_p1  ;;  %p2411_p13 = scmp.ne.s32.totalorder %s419_s23, %s2410_s28 }
  0x1f   : > { %p2419_p7 = scmp.lt.s32.totalorder %s2410_s28, %s2410_s28 }
  0x20   : > { %p2401_p12 = pneg %p2803_p11 }
  0x21   : > { %p2420_p10 = por %p2419_p7, %p2418_p5 }
  0x22   : > { %s438_s26 = sshll.u32 %s3513_s8, 4  ;;  %p2413_p0 = pnand %p2411_p13, %p2401_p12  ;;  %s439_s26 = int_to_ptr.vmem [resolvable:$true] %s438_s26 }
  0x24   : > { %p2414_p3 = pneg %p2413_p0 }
  0x26   : > { %p2421_p2 = pnand %p2420_p10, %p2414_p3 }
  0x28   : > { %2424 = shalt.err (!%p2421_p2)
}
  0x29   : > { %s2655_s22 = smov 256   ;;  %s2656_s24 = smov 16  }
  0x2a   : > { %s3515_s5 = sld [smem:[#allocation30_spill]]  ;;  %s2425_s8 = scalar_lea.vmem %s439_s26, 16 }
  0x2b   : > { %p2426_p9 = scmp.ne.s32.totalorder %s439_s26, %s2425_s8  ;;  %p2433_p1 = scmp.lt.s32.totalorder %s439_s26, %s439_s26 }
  0x2c   : > { %p2434_p6 = scmp.lt.s32.totalorder %s2425_s8, %s2425_s8 }
  0x2d   : > { %p2428_p13 = pnand %p2426_p9, %p2401_p12 }
  0x2e   : > { %p2435_p5 = por %p2434_p6, %p2433_p1 }
  0x2f   : > { %p2429_p0 = pneg %p2428_p13 }
  0x30   : > { %2255 = dma.hbm_to_vmem [thread:$0]  (!%p2803_p11), %s3515_s5, 1024, %s419_s23, [#allocation7], %s2655_s22, %s2655_s22, %s2656_s24  }
  0x31   : > { %p2436_p10 = pnand %p2435_p5, %p2429_p0 }
  0x33   : > { %2439 = shalt.err (!%p2436_p10)
}
  0x34   : > { %s2657_s28 = smov [#allocation8]   ;;  %s2823_s18 = sadd.s32 1, %s2652_s16  }
  0x35   : > { %2258 = dma.vmem_to_smem (!%p2803_p11), %s439_s26, 16, %s2657_s28, [#allocation5]  }
  0x36   : > { %3516 = sst [smem:[#allocation26_spill]] %s2823_s18  ;;  %s88_s8 = sadd.s32 1, %s2648_s15 }
  0x37   : > { %s85_s23 = ssub.s32 %s2652_s16, %s2823_s18  ;;  %p95_p1 = scmp.ne.s32.totalorder %s2648_s15, %s2644_s30 }
  0x38   : > { %p86_p2 = scmp.eq.s32.totalorder %s85_s23, 0  ;;  %p96_p6 = scmp.eq.s32.totalorder %s2652_s16, 0 }
  0x39   : > { %p3517_p12 = scmp.eq.s32.totalorder %s2770_s17, 1  ;;  %p2281_p7 = scmp.lt.s32.totalorder %s2652_s16, 2 }
  0x3a   : > { %s2839_s22 = scalar_select %p86_p2, %s2648_s15, %s88_s8  }
  0x3b   : > { %p2833_p3 = por %p3517_p12, %p95_p1  ;;  %p97_p9 = por %p96_p6, %p95_p1 }
  0x3c   : > { %3519 = sst [smem:[#allocation27_spill]] %s2839_s22  ;;  %s449_s24 = sand.u32 1, %s2648_s15  }
  0x3d   : > { %s3518_s27 = scalar_select %p2833_p3, 1, 0 }
  0x3e   : > { %s2060_s25 = sshll.u32 %s449_s24, 3  ;;  %s2061_s26 = sshll.u32 %s2652_s16, 7 }
  0x3f   : > { %s2846_s20 = scalar_lea.hbm %s3470_s2, %s2061_s26  ;;  %s453_s23 = scalar_lea.vmem [#allocation2], %s2060_s25 }
  0x40   : > { %s460_s18 = sshll.u32 %s453_s23, 4  ;;  %p2848_p11 = pnand %p2281_p7, %p97_p9  ;;  %s461_s18 = int_to_ptr.vmem [resolvable:$true] %s460_s18 }
  0x41   : > { %s450_s8 = scalar_lea.sflag [#allocation3], %s449_s24  ;;  %s2440_s22 = scalar_lea.hbm %s2846_s20, 128 }
  0x42   : > { %p2441_p13 = scmp.ne.s32.totalorder %s2846_s20, %s2440_s22  ;;  %p2442_p0 = pneg %p2848_p11 }
  0x43   : > { %s2445_s28 = scalar_lea.hbm %s3470_s2, 256  ;;  %p2446_p1 = scmp.lt.s32.totalorder %s2846_s20, %s3470_s2 }
  0x44   : > { %p2443_p5 = pnand %p2442_p0, %p2441_p13  ;;  %p2447_p2 = scmp.lt.s32.totalorder %s2445_s28, %s2440_s22 }
  0x46   : > { %p2444_p10 = pneg %p2443_p5  ;;  %p2448_p6 = por %p2447_p2, %p2446_p1 }
  0x48   : > { %p2449_p12 = pnand %p2448_p6, %p2444_p10 }
  0x4a   : > { %2452 = shalt.err (!%p2449_p12)
}
  0x4b   : > { %s2453_s23 = scalar_lea.vmem %s461_s18, 128  ;;  %s2658_s24 = smov [#allocation2]  }
  0x4c   : > { %p2454_p7 = scmp.ne.s32.totalorder %s461_s18, %s2453_s23  ;;  %s2458_s16 = sshll.u32 %s2658_s24, 4  ;;  %s2459_s16 = int_to_ptr.vmem [resolvable:$false] %s2458_s16 }
  0x4d   : > { %s2460_s13 = scalar_lea.vmem %s2459_s16, 256  ;;  %p2461_p13 = scmp.lt.s32.totalorder %s461_s18, %s2459_s16 }
  0x4e   : > { %p2456_p9 = pnand %p2454_p7, %p2442_p0  ;;  %p2462_p5 = scmp.lt.s32.totalorder %s2460_s13, %s2453_s23 }
  0x50   : > { %p2457_p3 = pneg %p2456_p9  ;;  %p2463_p4 = por %p2462_p5, %p2461_p13 }
  0x52   : > { %p2464_p8 = pnand %p2463_p4, %p2457_p3 }
  0x54   : > { %2467 = shalt.err (!%p2464_p8)
}
  0x55   : > { %2262 = dma.hbm_to_vmem [thread:$0]  (!%p2848_p11), %s2846_s20, 128, %s461_s18, %s450_s8  }
  0x56   : > { %p3521_p10 = scmp.ne.s32.totalorder %s3512_s21, 0 }
  0x57   : > { %s2869_s15 = sand.u32 (!%p3521_p10), 1, %s2644_s30   ;;  %p3522_p0 = scmp.ne.s32.totalorder (!%p3521_p10), %s3509_s19, 0 }
  0x58   : > { %469 = sbr.rel (%p3521_p10) target bundleno = 1867 (0x74b), region = 56  ;;  %s2063_s22 = sshll.u32 (!%p3521_p10), %s2869_s15, 3 }
  0x59   : > { %s472_s5 = scalar_lea.sflag (!%p3521_p10), [#allocation3], %s2869_s15  ;;  %s475_s16 = scalar_lea.vmem (!%p3521_p10), [#allocation2], %s2063_s22 }
  0x5d   : > { %2615 = dma.done.wait (%p3522_p0), %s472_s5, 128  }
  0x5e   : > { %2617 = vsyncadd (%p3522_p0), %s472_s5, 4294967168  ;;  %p3523_p4 = scmp.eq.s32.totalorder %s2770_s17, 0 }
  0x60   : > { %2619 = dma.done.wait (%p3523_p4), [#allocation7], 1024   ;;  %p3524_p8 = pmov %p3523_p4 }
  0x61   : > { %p3525_p3 = pmov %p3523_p4 }
  0x62   : > { %2621 = vsyncadd (%p3524_p8), [#allocation7], 4294966272 }
  0x63   : > { %2623 = dma.done.wait (%p3525_p3), [#allocation5], 16   ;;  %p3526_p11 = pmov %p3525_p3 }
  0x65   : > { %2625 = vsyncadd (%p3526_p11), [#allocation5], 4294967280 }
  0x66   : > { %488 = sfence }
  0x67   : > { %v566_v0 = vld [vmem:[%s475_s16] sm:$0xff]  ;;  %s3527_s0 = sld [smem:[#allocation28_spill]]  ;;  %vm567_vm0 = vcmask 64512   ;;  %v2659_v5 = vmov 64   ;;  %s2660_s28 = smov 63   ;;  %v729_v14 = vlaneseq  ;;  %vm757_vm4 = vcmask 261120  }
  0x68   : > { %2158 = vmatprep.subr.mxu0 %v566_v0  ;;  %2331 = vset.pattern.permute.xlu0 %v2659_v5  ;;  %s2661_s25 = smov 61   ;;  %s3528_s1 = sld [smem:[#allocation29_spill]]  ;;  %v2662_v47 = vmov 66  }
  0x69   : > { %2159 = vmatpush3.msra.mxu0 %v566_v0  ;;  %2332 = vset.pattern.permute.xlu1 %v2659_v5  ;;  %v2925_v16 = vshrl.u32 %v729_v14, 7  ;;  %s2663_s20 = smov 96   ;;  %s2100_s22 = sld [smem:[#allocation8 + $0x2]] }
  0x6a   : > { %p553_p1 = scmp.lt.s32.totalorder %s2770_s17, 1  ;;  %s2666_s26 = smov 60  }
  0x6b   : > { %v2928_v18 = vsub.s32 0, %v2925_v16  ;;  %p3529_p6 = scmp.ne.s32.totalorder %s3518_s27, 0  ;;  %s2667_s29 = smov [#allocation9]  }
  0x6c   : > { %s554_s5 = scalar_select %p553_p1, %s2770_s17, 1 }
  0x6d   : > { %v558_v1 = vld [vmem:[%s3527_s0] sm:$0xff]  ;;  %v559_v2 = vld [vmem:[%s3527_s0 + $0x8] sm:$0xff]  ;;  %v560_v3 = vld [vmem:[%s3527_s0 + $0x10] sm:$0xff]  ;;  %s2472_s21 = sshll.u32 %s2667_s29, 4  ;;  %s2473_s21 = int_to_ptr.vmem [resolvable:$false] %s2472_s21 }
  0x6e   : > { %2160 = vmatprep.mubr.msk.f32.mxu0 %vm567_vm0, %v558_v1  ;;  %v561_v4 = vld [vmem:[%s3527_s0 + $0x18] sm:$0xff]  ;;  %v2934_v22 = vld [vmem:[%s3528_s1] sm:$0xff]  ;;  %v2939_v24 = vld [vmem:[%s3528_s1 + $0x8] sm:$0xff]  ;;  %s2120_s16 = sshll.u32 %s554_s5, 5  ;;  %s2474_s18 = scalar_lea.vmem %s2473_s21, 1024 }
  0x6f   : > { %2161 = vmatmul.mubr.msk.f32.vlgmr.msra.gmra.mxu0 %vm567_vm0, %v559_v2  ;;  %vm749_vm1 = vcmp.gt.f32.partialorder %v2934_v22, 0.0  ;;  %vm750_vm5 = vcmp.gt.f32.partialorder %v2939_v24, 0.0  ;;  %v2948_v35 = vld [vmem:[%s3528_s1 + $0x10] sm:$0xff]  ;;  %v2957_v40 = vld [vmem:[%s3528_s1 + $0x18] sm:$0xff]  ;;  %s3205_s19 = scalar_lea.vmem %s3482_s14, %s2120_s16 }
  0x70   : > { %2163 = vmatprep.mubr.msk.f32.mxu0 %vm567_vm0, %v560_v3  ;;  %vm751_vm7 = vcmp.gt.f32.partialorder %v2948_v35, 0.0  ;;  %vm752_vm9 = vcmp.gt.f32.partialorder %v2957_v40, 0.0 }
  0x73   : > { %2164 = vmatmul.mubr.msk.f32.gmra.mxu0 %vm567_vm0, %v561_v4 }
 0x12f   : > { %v2897_v6 = vpop.f32.mrf.mxu0 }
 0x131   : > { %v2899_v7 = vpop.f32.mrf.mxu0 }
 0x132   : > { %669 = vrot.lane.b32.xlu0 %v2899_v7, %s2660_s28 }
 0x133   : > { %v2902_v8 = vpop.f32.mrf.mxu0 }
 0x134   : > { %675 = vrot.lane.b32.xlu1 %v2902_v8, %s2660_s28  ;;  %2166 = vmatprep.subr.mxu1 %v2902_v8 }
 0x135   : > { %v2906_v9 = vpop.f32.mrf.mxu0  ;;  %2167 = vmatpush3.msra.mxu1 %v2902_v8 }
 0x136   : > { %671 = vrot.lane.b32.xlu0 %v2897_v6, %s2660_s28  ;;  %2168 = vmatprep.subr.mxu1 %v2906_v9 }
 0x137   : > { %2169 = vmatpush3.msra.mxu1 %v2906_v9 }
 0x138   : > { %673 = vrot.lane.b32.xlu1 %v2906_v9, %s2660_s28  ;;  %2170 = vmatprep.subr.mxu1 %v2897_v6 }
 0x139   : > { %2171 = vmatpush3.msra.mxu1 %v2897_v6 }
 0x13a   : > { %714 = vperm.xlu0 %2331, %v2899_v7   ;;  %2172 = vmatprep.subr.mxu1 %v2899_v7 }
 0x13b   : > { %2173 = vmatpush3.msra.mxu1 %v2899_v7 }
 0x13c   : > { %718 = vperm.xlu1 %2332, %v2897_v6  }
 0x13e   : > { %726 = vperm.xlu0 %2331, %v2902_v8  }
 0x140   : > { %722 = vperm.xlu1 %2332, %v2906_v9  }
 0x142   : > { %2333 = vset.pattern.permute.xlu0 %v2662_v47 }
 0x1a4   : > { %v670_v10 = vpop.permute.xlu0 %669 }
 0x1a5   : > { %681 = vxpose.xlu1.b32.start [1/4] (short) (narrow) %v670_v10, 8 }
 0x1a6   : > { %v676_v11 = vpop.permute.xlu1 %675 }
 0x1a8   : > { %v672_v12 = vpop.permute.xlu0 %671 }
 0x1a9   : > { %682 = vxpose.xlu1.b32.cont [2/4] (short) (narrow) %v672_v12, 8 }
 0x1aa   : > { %v674_v13 = vpop.permute.xlu1 %673 }
 0x1ad   : > { %683 = vxpose.xlu1.b32.cont [3/4] (short) (narrow) %v674_v13, 8 }
 0x1b1   : > { %684 = vxpose.xlu1.b32.end [4/4] (short) (narrow) %v676_v11, 8 }
 0x1b5   : > { %v715_v19 = vpop.permute.xlu0 %714 }
 0x1b7   : > { %v719_v15 = vpop.permute.xlu1 %718 }
 0x1b9   : > { %v727_v29 = vpop.permute.xlu0 %726 }
 0x1bb   : > { %v723_v17 = vpop.permute.xlu1 %722 }
 0x1cf   : > { %929 = vrot.lane.b32.xlu1 %v2897_v6, %s2661_s25 }
 0x1d0   : > { %2334 = vset.pattern.permute.xlu1 %v2662_v47 }
 0x1d3   : > { %933 = vrot.lane.b32.xlu1 %v2902_v8, %s2661_s25 }
 0x221   : > { %v697_v20 = vpop.trf.xlu1 }
 0x222   : > { %v732_v21 = vrot.slane %v697_v20, %v2928_v18 }
 0x224   : > { %v733_v23 = vadd.f32 %v732_v21, %v715_v19  ;;  %v734_v25 = vadd.f32 %v732_v21, %v719_v15  ;;  %v735_v26 = vadd.f32 %v732_v21, %v723_v17  ;;  %v736_v33 = vadd.f32 %v732_v21, %v727_v29 }
 0x226   : > { %vm737_vm2 = vcmp.gt.f32.partialorder %v733_v23, 0.0  ;;  %v741_v27 = vmul.f32 0.2, %v733_v23  ;;  %vm738_vm3 = vcmp.gt.f32.partialorder %v734_v25, 0.0  ;;  %v742_v28 = vmul.f32 0.2, %v734_v25 }
 0x227   : > { %v743_v32 = vmul.f32 0.2, %v735_v26  ;;  %vm739_vm6 = vcmp.gt.f32.partialorder %v735_v26, 0.0  ;;  %v744_v39 = vmul.f32 0.2, %v736_v33  ;;  %vm740_vm8 = vcmp.gt.f32.partialorder %v736_v33, 0.0 }
 0x228   : > { %v745_v30 = vsel %vm737_vm2, %v733_v23, %v741_v27  ;;  %v746_v31 = vsel %vm738_vm3, %v734_v25, %v742_v28  ;;  %vm1313_vm2 = vcmask 523264  }
 0x229   : > { %v753_v34 = vsel %vm749_vm1, %v745_v30, -1e+30  ;;  %v754_v37 = vsel %vm750_vm5, %v746_v31, -1e+30  ;;  %v747_v38 = vsel %vm739_vm6, %v735_v26, %v743_v32  ;;  %v748_v43 = vsel %vm740_vm8, %v736_v33, %v744_v39 }
 0x22a   : > { %v758_v36 = vsel %vm757_vm4, %v753_v34, -inf  ;;  %v761_v41 = vsel %vm757_vm4, %v754_v37, -inf  ;;  %v755_v42 = vsel %vm751_vm7, %v747_v38, -1e+30  ;;  %v756_v45 = vsel %vm752_vm9, %v748_v43, -1e+30 }
 0x22b   : > { %759 = vmax.xlane.f32.xlu0 %v758_v36  ;;  %v764_v44 = vsel %vm757_vm4, %v755_v42, -inf  ;;  %v767_v46 = vsel %vm757_vm4, %v756_v45, -inf }
 0x22f   : > { %762 = vmax.xlane.f32.xlu0 %v761_v41 }
 0x233   : > { %765 = vmax.xlane.f32.xlu0 %v764_v44 }
 0x237   : > { %768 = vmax.xlane.f32.xlu0 %v767_v46 }
 0x241   : > { %v930_v13 = vpop.permute.xlu1 %929 }
 0x245   : > { %v934_v15 = vpop.permute.xlu1 %933 }
 0x24d   : > { %927 = vrot.lane.b32.xlu0 %v2899_v7, %s2661_s25 }
 0x251   : > { %931 = vrot.lane.b32.xlu0 %v2906_v9, %s2661_s25  ;;  %s3130_s25 = sshll.u32 %s2869_s15, 5 }
 0x252   : > { %s3138_s23 = scalar_lea.vmem [#allocation9], %s3130_s25  ;;  %s3164_s24 = scalar_lea.vmem [#allocation10], %s3130_s25 }
 0x253   : > { %s3224_s8 = scalar_lea.vmem [#allocation12], %s3130_s25  ;;  %s1753_s28 = sshll.u32 %s3138_s23, 4  ;;  %s3255_s28 = int_to_ptr.vmem [resolvable:$true] %s1753_s28 }
 0x254   : > { %s2468_s13 = scalar_lea.vmem %s3255_s28, 512  ;;  %p2475_p9 = scmp.lt.s32.totalorder %s3255_s28, %s2473_s21 }
 0x255   : > { %p2469_p2 = scmp.ne.s32.totalorder %s3255_s28, %s2468_s13  ;;  %p2476_p13 = scmp.lt.s32.totalorder %s2474_s18, %s2468_s13 }
 0x257   : > { %p2470_p12 = pnand %p2469_p2, %p3529_p6  ;;  %p2477_p5 = por %p2476_p13, %p2475_p9 }
 0x259   : > { %p2471_p7 = pneg %p2470_p12 }
 0x25b   : > { %p2478_p10 = pnand %p2477_p5, %p2471_p7 }
 0x2b4   : > { %v760_v48 = vpop.xlane.xlu0 %759 }
 0x2b5   : > { %v770_v49 = vsub.f32 %v753_v34, %v760_v48 }
 0x2b7   : > { %v774_v50 = vmul.f32 1.442695, %v770_v49 }
 0x2b8   : > { %v763_v51 = vpop.xlane.xlu0 %762 }
 0x2b9   : > { %2335 = vpow2.f32 %v774_v50  ;;  %v771_v52 = vsub.f32 %v754_v37, %v763_v51 }
 0x2bb   : > { %v776_v53 = vmul.f32 1.442695, %v771_v52 }
 0x2bc   : > { %v766_v54 = vpop.xlane.xlu0 %765 }
 0x2bd   : > { %2337 = vpow2.f32 %v776_v53  ;;  %v772_v55 = vsub.f32 %v755_v42, %v766_v54 }
 0x2bf   : > { %v778_v56 = vmul.f32 1.442695, %v772_v55 }
 0x2c0   : > { %v769_v57 = vpop.xlane.xlu0 %768 }
 0x2c1   : > { %2339 = vpow2.f32 %v778_v56  ;;  %v773_v58 = vsub.f32 %v756_v45, %v769_v57 }
 0x2c3   : > { %v780_v59 = vmul.f32 1.442695, %v773_v58 }
 0x2c4   : > { %v928_v12 = vpop.permute.xlu0 %927 }
 0x2c5   : > { %2341 = vpow2.f32 %v780_v59 }
 0x2c6   : > { %v2336_v60 = vpop.eup %2335 }
 0x2c7   : > { %v782_v61 = vmul.f32 %v2336_v60, %v2934_v22 }
 0x2c8   : > { %v932_v14 = vpop.permute.xlu0 %931 }
 0x2c9   : > { %v786_v62 = vsel %vm757_vm4, %v782_v61, 0.0 }
 0x2ca   : > { %v2338_v63 = vpop.eup %2337  ;;  %787 = vadd.xlane.f32.xlu0 %v786_v62 }
 0x2cb   : > { %v783_v0 = vmul.f32 %v2338_v63, %v2939_v24 }
 0x2cd   : > { %v789_v1 = vsel %vm757_vm4, %v783_v0, 0.0 }
 0x2ce   : > { %v2340_v2 = vpop.eup %2339  ;;  %790 = vadd.xlane.f32.xlu1 %v789_v1  ;;  %v1198_v1 = vld [vmem:[%s3471_s3 + $0x30] sm:$0xff] }
 0x2cf   : > { %v784_v3 = vmul.f32 %v2340_v2, %v2948_v35  ;;  %v1197_v2 = vld [vmem:[%s3471_s3 + $0x28] sm:$0xff] }
 0x2d1   : > { %v792_v4 = vsel %vm757_vm4, %v784_v3, 0.0 }
 0x2d2   : > { %v2342_v5 = vpop.eup %2341  ;;  %793 = vadd.xlane.f32.xlu0 %v792_v4  ;;  %v1194_v4 = vld [vmem:[%s3471_s3 + $0x10] sm:$0xff] }
 0x2d3   : > { %v785_v10 = vmul.f32 %v2342_v5, %v2957_v40  ;;  %v1193_v5 = vld [vmem:[%s3471_s3 + $0x8] sm:$0xff] }
 0x2d5   : > { %v795_v11 = vsel %vm757_vm4, %v785_v10, 0.0 }
 0x2d6   : > { %796 = vadd.xlane.f32.xlu0 %v795_v11 }
 0x2df   : > { %976 = vperm.xlu1 %2334, %v2897_v6  }
 0x2e3   : > { %980 = vperm.xlu1 %2334, %v2906_v9  }
 0x2e7   : > { %984 = vperm.xlu1 %2334, %v2902_v8  }
 0x2ec   : > { %972 = vperm.xlu0 %2333, %v2899_v7  }
 0x310   : > { %939 = vxpose.xlu1.b32.start [1/4] (short) (narrow) %v928_v12, 8 }
 0x314   : > { %940 = vxpose.xlu1.b32.cont [2/4] (short) (narrow) %v930_v13, 8 }
 0x318   : > { %941 = vxpose.xlu1.b32.cont [3/4] (short) (narrow) %v932_v14, 8 }
 0x31c   : > { %942 = vxpose.xlu1.b32.end [4/4] (short) (narrow) %v934_v15, 8 }
 0x353   : > { %v788_v17 = vpop.xlane.xlu0 %787 }
 0x354   : > { %v798_v19 = vadd.f32 1e-30, %v788_v17 }
 0x356   : > { %2343 = vrcp.f32 %v798_v19 }
 0x357   : > { %v791_v20 = vpop.xlane.xlu1 %790 }
 0x358   : > { %v799_v21 = vadd.f32 1e-30, %v791_v20 }
 0x35a   : > { %2345 = vrcp.f32 %v799_v21 }
 0x35b   : > { %v794_v23 = vpop.xlane.xlu0 %793  ;;  %v977_v37 = vpop.permute.xlu1 %976 }
 0x35c   : > { %v800_v25 = vadd.f32 1e-30, %v794_v23 }
 0x35e   : > { %2347 = vrcp.f32 %v800_v25 }
 0x35f   : > { %v797_v26 = vpop.xlane.xlu0 %796  ;;  %v981_v38 = vpop.permute.xlu1 %980 }
 0x360   : > { %v801_v27 = vadd.f32 1e-30, %v797_v26 }
 0x362   : > { %2349 = vrcp.f32 %v801_v27 }
 0x363   : > { %v2344_v28 = vpop.eup %2343  ;;  %v985_v39 = vpop.permute.xlu1 %984 }
 0x364   : > { %v803_v29 = vmul.f32 %v2344_v28, %v782_v61 }
 0x366   : > { %2174 = vmatprep.mubr.msk.f32.mxu1 %vm757_vm4, %v803_v29 }
 0x367   : > { %v2346_v30 = vpop.eup %2345  ;;  %v973_v43 = vpop.permute.xlu0 %972 }
 0x368   : > { %v805_v31 = vmul.f32 %v2346_v30, %v783_v0  ;;  %v1199_v0 = vld [vmem:[%s3471_s3 + $0x38] sm:$0xff] }
 0x369   : > { %1248 = vmatprep.subr.mxu1 %v1199_v0  ;;  %v3112_v0 = vld [vmem:[%s3475_s7] sm:$0xff] }
 0x36a   : > { %2175 = vmatmul.mubr.msk.f32.vlgmr.msra.gmra.mxu1 %vm757_vm4, %v805_v31 }
 0x36b   : > { %v2348_v32 = vpop.eup %2347  ;;  %1249 = vmatpush1.msra.mxu1 %v1198_v1 }
 0x36c   : > { %v807_v33 = vmul.f32 %v2348_v32, %v784_v3  ;;  %1250 = vmatprep.subr.mxu1 %v1197_v2  ;;  %v1196_v3 = vld [vmem:[%s3471_s3 + $0x20] sm:$0xff] }
 0x36d   : > { %1251 = vmatpush1.msra.mxu1 %v1196_v3 }
 0x36e   : > { %2177 = vmatprep.mubr.msk.f32.mxu1 %vm757_vm4, %v807_v33 }
 0x36f   : > { %v2350_v34 = vpop.eup %2349 }
 0x370   : > { %v809_v36 = vmul.f32 %v2350_v34, %v785_v10  ;;  %v2664_v10 = vmov 0.0  }
 0x372   : > { %2178 = vmatmul.mubr.msk.f32.gmra.mxu1 %vm757_vm4, %v809_v36 }
 0x373   : > { %1288 = vmatprep.mubr.f32.mxu1 %v2664_v10 }
 0x38c   : > { %v955_v41 = vpop.trf.xlu1 }
 0x38d   : > { %v990_v42 = vrot.slane %v955_v41, %v2928_v18 }
 0x38f   : > { %v991_v44 = vadd.f32 %v990_v42, %v973_v43  ;;  %v992_v45 = vadd.f32 %v990_v42, %v977_v37  ;;  %v993_v46 = vadd.f32 %v990_v42, %v981_v38  ;;  %v994_v52 = vadd.f32 %v990_v42, %v985_v39 }
 0x391   : > { %vm995_vm10 = vcmp.gt.f32.partialorder %v991_v44, 0.0  ;;  %v999_v47 = vmul.f32 0.2, %v991_v44  ;;  %vm996_vm11 = vcmp.gt.f32.partialorder %v992_v45, 0.0  ;;  %v1000_v48 = vmul.f32 0.2, %v992_v45 }
 0x392   : > { %v1001_v51 = vmul.f32 0.2, %v993_v46  ;;  %vm997_vm12 = vcmp.gt.f32.partialorder %v993_v46, 0.0  ;;  %v1002_v57 = vmul.f32 0.2, %v994_v52  ;;  %vm998_vm13 = vcmp.gt.f32.partialorder %v994_v52, 0.0 }
 0x393   : > { %v1003_v49 = vsel %vm995_vm10, %v991_v44, %v999_v47  ;;  %v1004_v50 = vsel %vm996_vm11, %v992_v45, %v1000_v48  ;;  %vm1463_vm10 = vcmask 556032  }
 0x394   : > { %v1007_v53 = vsel %vm749_vm1, %v1003_v49, -1e+30  ;;  %v1008_v55 = vsel %vm750_vm5, %v1004_v50, -1e+30  ;;  %v1005_v56 = vsel %vm997_vm12, %v993_v46, %v1001_v51  ;;  %v1006_v60 = vsel %vm998_vm13, %v994_v52, %v1002_v57 }
 0x395   : > { %v1011_v54 = vsel %vm757_vm4, %v1007_v53, -inf  ;;  %v1014_v58 = vsel %vm757_vm4, %v1008_v55, -inf  ;;  %v1009_v59 = vsel %vm751_vm7, %v1005_v56, -1e+30  ;;  %v1010_v62 = vsel %vm752_vm9, %v1006_v60, -1e+30 }
 0x396   : > { %1012 = vmax.xlane.f32.xlu0 %v1011_v54  ;;  %v1017_v61 = vsel %vm757_vm4, %v1009_v59, -inf  ;;  %v1020_v63 = vsel %vm757_vm4, %v1010_v62, -inf  ;;  %v3070_v60 = vld [vmem:[%s3475_s7 + $0x30] sm:$0xff]  ;;  %vm1676_vm9 = vcmask 7168  }
 0x39a   : > { %1015 = vmax.xlane.f32.xlu0 %v1014_v58 }
 0x39e   : > { %1018 = vmax.xlane.f32.xlu0 %v1017_v61  ;;  %v3091_v61 = vld [vmem:[%s3475_s7 + $0x18] sm:$0xff] }
 0x3a2   : > { %1021 = vmax.xlane.f32.xlu0 %v1020_v63  ;;  %v3105_v63 = vld [vmem:[%s3475_s7 + $0x8] sm:$0xff] }
 0x3b8   : > { %1069 = vrot.lane.b32.xlu0 %v2902_v8, %s2663_s20  ;;  %v1195_v8 = vld [vmem:[%s3471_s3 + $0x18] sm:$0xff] }
 0x3b9   : > { %1252 = vmatprep.subr.mxu1 %v1195_v8 }
 0x3ba   : > { %1253 = vmatpush1.msra.mxu1 %v1194_v4 }
 0x3bb   : > { %1254 = vmatprep.subr.mxu1 %v1193_v5 }
 0x3bc   : > { %1067 = vrot.lane.b32.xlu0 %v2906_v9, %s2663_s20  ;;  %v1192_v9 = vld [vmem:[%s3471_s3] sm:$0xff] }
 0x3bd   : > { %1255 = vmatpush1.msra.mxu1 %v1192_v9 }
 0x41f   : > { %v1013_v11 = vpop.xlane.xlu0 %1012 }
 0x420   : > { %v1023_v12 = vsub.f32 %v1007_v53, %v1013_v11 }
 0x422   : > { %v1027_v13 = vmul.f32 1.442695, %v1023_v12 }
 0x423   : > { %v1016_v14 = vpop.xlane.xlu0 %1015 }
 0x424   : > { %2351 = vpow2.f32 %v1027_v13  ;;  %v1024_v15 = vsub.f32 %v1008_v55, %v1016_v14 }
 0x426   : > { %v1029_v17 = vmul.f32 1.442695, %v1024_v15 }
 0x427   : > { %v1019_v19 = vpop.xlane.xlu0 %1018 }
 0x428   : > { %2353 = vpow2.f32 %v1029_v17  ;;  %v1025_v20 = vsub.f32 %v1009_v59, %v1019_v19  ;;  %v3063_v59 = vld [vmem:[%s3475_s7 + $0x38] sm:$0xff] }
 0x429   : > { %2216 = vmatprep.subr.mxu1 %v3063_v59 }
 0x42a   : > { %v1031_v21 = vmul.f32 1.442695, %v1025_v20  ;;  %v2176_v23 = vpop.f32.mrf.mxu1 }
 0x42b   : > { %v913_v25 = vmul.f32 1.442695, %v2176_v23  ;;  %v1022_v26 = vpop.xlane.xlu0 %1021  ;;  %vm908_vm15 = vcmp.gt.f32.partialorder %v2176_v23, 0.0 }
 0x42c   : > { %2355 = vpow2.f32 %v1031_v21  ;;  %v1026_v27 = vsub.f32 %v1010_v62, %v1022_v26  ;;  %v888_v28 = vpop.f32.mrf.mxu1  ;;  %v3098_v62 = vld [vmem:[%s3475_s7 + $0x10] sm:$0xff]  ;;  %v1200_v26 = vld [vmem:[%s3472_s4] sm:$0x3] }
 0x42d   : > { %v911_v29 = vmul.f32 1.442695, %v888_v28  ;;  %2357 = vpow2.f32 %v913_v25  ;;  %vm907_vm14 = vcmp.gt.f32.partialorder %v888_v28, 0.0 }
 0x42e   : > { %v1033_v30 = vmul.f32 1.442695, %v1026_v27  ;;  %v1208_v27 = vsub.s32 1, %v2925_v16 }
 0x42f   : > { %2359 = vpow2.f32 %v911_v29  ;;  %v1070_v31 = vpop.permute.xlu0 %1069 }
 0x430   : > { %2361 = vpow2.f32 %v1033_v30  ;;  %2180 = vmatprep.subr.mxu0 %v1070_v31  ;;  %v1209_v29 = vrot.slane %v1200_v26, %v1208_v27 }
 0x431   : > { %v2352_v32 = vpop.eup %2351  ;;  %2181 = vmatpush3.msra.mxu0 %v1070_v31 }
 0x432   : > { %v2179_v33 = vpop.f32.mrf.mxu1  ;;  %v3030_v34 = vmul.f32 %v2352_v32, %v2934_v22 }
 0x433   : > { %v917_v36 = vmul.f32 1.442695, %v2179_v33  ;;  %v1068_v37 = vpop.permute.xlu0 %1067  ;;  %vm910_vm1 = vcmp.gt.f32.partialorder %v2179_v33, 0.0 }
 0x434   : > { %v898_v38 = vpop.f32.mrf.mxu1  ;;  %2182 = vmatprep.subr.mxu0 %v1068_v37  ;;  %v1039_v39 = vsel %vm757_vm4, %v3030_v34, 0.0 }
 0x435   : > { %v2354_v41 = vpop.eup %2353  ;;  %v915_v42 = vmul.f32 1.442695, %v898_v38  ;;  %1040 = vadd.xlane.f32.xlu0 %v1039_v39  ;;  %2183 = vmatpush3.msra.mxu0 %v1068_v37  ;;  %2363 = vpow2.f32 %v917_v36  ;;  %vm909_vm0 = vcmp.gt.f32.partialorder %v898_v38, 0.0 }
 0x436   : > { %v3035_v43 = vmul.f32 %v2354_v41, %v2939_v24 }
 0x437   : > { %2365 = vpow2.f32 %v915_v42 }
 0x438   : > { %v1042_v22 = vsel %vm757_vm4, %v3035_v43, 0.0 }
 0x439   : > { %v2356_v44 = vpop.eup %2355  ;;  %1043 = vadd.xlane.f32.xlu1 %v1042_v22 }
 0x43a   : > { %v3040_v45 = vmul.f32 %v2356_v44, %v2948_v35  ;;  %v2358_v46 = vpop.eup %2357 }
 0x43b   : > { %v2081_v51 = vadd.f32 -1.0, %v2358_v46 }
 0x43c   : > { %v2360_v47 = vpop.eup %2359  ;;  %v1045_v48 = vsel %vm757_vm4, %v3040_v45, 0.0 }
 0x43d   : > { %v2362_v49 = vpop.eup %2361  ;;  %v2080_v50 = vadd.f32 -1.0, %v2360_v47  ;;  %1046 = vadd.xlane.f32.xlu0 %v1045_v48  ;;  %v924_v54 = vsel %vm908_vm15, %v2176_v23, %v2081_v51  ;;  %v1346_v51 = vld [vmem:[#allocation6 + $0x20] sm:$0xff] }
 0x43e   : > { %v3045_v24 = vmul.f32 %v2362_v49, %v2957_v40  ;;  %v1349_v49 = vld [vmem:[#allocation6 + $0x38] sm:$0xff] }
 0x43f   : > { %v923_v52 = vsel %vm907_vm14, %v888_v28, %v2080_v50  ;;  %v1205_v28 = vrot.slane %v1200_v26, %v2928_v18  ;;  %v1348_v50 = vld [vmem:[#allocation6 + $0x30] sm:$0xff] }
 0x440   : > { %2092 = vmatmul.mubr.msk.f32.vlgmr.msra.gmra.mxu1 %vm757_vm4, %v923_v52  ;;  %v1048_v35 = vsel %vm757_vm4, %v3045_v24, 0.0  ;;  %v1345_v52 = vld [vmem:[#allocation6 + $0x18] sm:$0xff] }
 0x441   : > { %1049 = vadd.xlane.f32.xlu0 %v1048_v35  ;;  %1294 = vmatprep.mubr.f32.mxu1 %v2664_v10  ;;  %v1344_v35 = vld [vmem:[#allocation6 + $0x10] sm:$0xff] }
 0x442   : > { %v2364_v53 = vpop.eup %2363  ;;  %2224 = vmatpush3.msra.mxu1 %v3063_v59 }
 0x443   : > { %v2083_v40 = vadd.f32 -1.0, %v2364_v53  ;;  %2217 = vmatprep.subr.mxu1 %v3070_v60  ;;  %v1343_v53 = vld [vmem:[#allocation6 + $0x8] sm:$0xff] }
 0x444   : > { %v2366_v55 = vpop.eup %2365  ;;  %2093 = vmatmul.mubr.msk.f32.gmra.mxu1 %vm757_vm4, %v924_v54  ;;  %v1342_v54 = vld [vmem:[#allocation6] sm:$0xff] }
 0x445   : > { %v2082_v56 = vadd.f32 -1.0, %v2366_v55  ;;  %1300 = vmatprep.mubr.f32.mxu1 %v2664_v10  ;;  %v926_v58 = vsel %vm910_vm1, %v2179_v33, %v2083_v40  ;;  %2225 = vmatpush3.msra.mxu1 %v3070_v60 }
 0x447   : > { %v925_v57 = vsel %vm909_vm0, %v898_v38, %v2082_v56 }
 0x448   : > { %2094 = vmatmul.mubr.msk.f32.gmra.mxu1 %vm757_vm4, %v925_v57 }
 0x449   : > { %1306 = vmatprep.mubr.f32.mxu1 %v2664_v10 }
 0x44a   : > { %1063 = vrot.lane.b32.xlu1 %v2899_v7, %s2663_s20  ;;  %v3084_v7 = vld [vmem:[%s3475_s7 + $0x20] sm:$0xff] }
 0x44c   : > { %2095 = vmatmul.mubr.msk.f32.gmra.mxu1 %vm757_vm4, %v926_v58 }
 0x457   : > { %1065 = vrot.lane.b32.xlu0 %v2897_v6, %s2663_s20  ;;  %v3077_v6 = vld [vmem:[%s3475_s7 + $0x28] sm:$0xff]  ;;  %s2665_s20 = smov 64  }
 0x458   : > { %2218 = vmatprep.subr.mxu1 %v3077_v6 }
 0x459   : > { %2226 = vmatpush3.msra.mxu1 %v3077_v6 }
 0x45a   : > { %2219 = vmatprep.subr.mxu1 %v3084_v7 }
 0x45b   : > { %2227 = vmatpush3.msra.mxu1 %v3084_v7 }
 0x45c   : > { %2220 = vmatprep.subr.mxu1 %v3091_v61 }
 0x45d   : > { %2228 = vmatpush3.msra.mxu1 %v3091_v61 }
 0x45e   : > { %2221 = vmatprep.subr.mxu1 %v3098_v62 }
 0x45f   : > { %2229 = vmatpush3.msra.mxu1 %v3098_v62 }
 0x460   : > { %2222 = vmatprep.subr.mxu1 %v3105_v63 }
 0x461   : > { %2230 = vmatpush3.msra.mxu1 %v3105_v63 }
 0x462   : > { %2223 = vmatprep.subr.mxu1 %v3112_v0 }
 0x463   : > { %2231 = vmatpush3.msra.mxu1 %v3112_v0 }
 0x4be   : > { %v1041_v1 = vpop.xlane.xlu0 %1040 }
 0x4bf   : > { %v1051_v2 = vadd.f32 1e-30, %v1041_v1 }
 0x4c1   : > { %2367 = vrcp.f32 %v1051_v2 }
 0x4c2   : > { %v1044_v3 = vpop.xlane.xlu1 %1043 }
 0x4c3   : > { %v1052_v8 = vadd.f32 1e-30, %v1044_v3 }
 0x4c5   : > { %2369 = vrcp.f32 %v1052_v8 }
 0x4c6   : > { %v1047_v4 = vpop.xlane.xlu0 %1046  ;;  %v1064_v15 = vpop.permute.xlu1 %1063 }
 0x4c7   : > { %v1053_v5 = vadd.f32 1e-30, %v1047_v4 }
 0x4c9   : > { %2371 = vrcp.f32 %v1053_v5 }
 0x4ca   : > { %v1050_v9 = vpop.xlane.xlu0 %1049 }
 0x4cb   : > { %v1054_v11 = vadd.f32 1e-30, %v1050_v9 }
 0x4cd   : > { %2373 = vrcp.f32 %v1054_v11 }
 0x4ce   : > { %v2368_v12 = vpop.eup %2367  ;;  %v1066_v13 = vpop.permute.xlu0 %1065 }
 0x4cf   : > { %2184 = vmatprep.subr.mxu0 %v1066_v13  ;;  %v1056_v14 = vmul.f32 %v2368_v12, %v3030_v34 }
 0x4d0   : > { %2185 = vmatpush3.msra.mxu0 %v1066_v13 }
 0x4d1   : > { %2186 = vmatprep.subr.mxu0 %v1064_v15  ;;  %2188 = vmatprep.mubr.msk.f32.mxu0 %vm757_vm4, %v1056_v14 }
 0x4d2   : > { %v2370_v17 = vpop.eup %2369  ;;  %2187 = vmatpush3.msra.mxu0 %v1064_v15 }
 0x4d3   : > { %v1058_v19 = vmul.f32 %v2370_v17, %v3035_v43  ;;  %1398 = vmatprep.subr.mxu0 %v1349_v49 }
 0x4d5   : > { %2189 = vmatmul.mubr.msk.f32.vlgmr.msra.gmra.mxu0 %vm757_vm4, %v1058_v19 }
 0x4d6   : > { %v2372_v20 = vpop.eup %2371  ;;  %1399 = vmatpush1.msra.mxu0 %v1348_v50 }
 0x4d7   : > { %v1060_v21 = vmul.f32 %v2372_v20, %v3040_v45 }
 0x4d9   : > { %2191 = vmatprep.mubr.msk.f32.mxu0 %vm757_vm4, %v1060_v21 }
 0x4da   : > { %v2374_v23 = vpop.eup %2373 }
 0x4db   : > { %v1062_v25 = vmul.f32 %v2374_v23, %v3045_v24  ;;  %v1347_v24 = vld [vmem:[#allocation6 + $0x28] sm:$0xff] }
 0x4dc   : > { %1400 = vmatprep.subr.mxu0 %v1347_v24 }
 0x4dd   : > { %2192 = vmatmul.mubr.msk.f32.gmra.mxu0 %vm757_vm4, %v1062_v25 }
 0x4de   : > { %1438 = vmatprep.mubr.f32.mxu0 %v2664_v10  ;;  %1401 = vmatpush1.msra.mxu0 %v1346_v51 }
 0x4df   : > { %1402 = vmatprep.subr.mxu0 %v1345_v52 }
 0x4e0   : > { %1403 = vmatpush1.msra.mxu0 %v1344_v35 }
 0x4e1   : > { %1404 = vmatprep.subr.mxu0 %v1343_v53 }
 0x4e2   : > { %1405 = vmatpush1.msra.mxu0 %v1342_v54 }
 0x4e3   : > { %2194 = vmatprep.subr.mxu0 %v3063_v59 }
 0x500   : > { %v1290_v30 = vpop.f32.mrf.mxu1 }
 0x501   : > { %v3135_v31 = vadd.f32 %v1290_v30, %v1205_v28 }
 0x502   : > { %v1292_v32 = vpop.f32.mrf.mxu1 }
 0x503   : > { %1314 = vst.msk [vmem:[%s3138_s23] sm:$0xff] %vm1313_vm2, %v3135_v31  ;;  %v3143_v33 = vadd.f32 %v1292_v32, %v1209_v29 }
 0x504   : > { %v1296_v34 = vpop.f32.mrf.mxu1 }
 0x505   : > { %v1297_v36 = vadd.f32 %v1296_v34, %v1205_v28 }
 0x506   : > { %v1298_v37 = vpop.f32.mrf.mxu1 }
 0x507   : > { %1315 = vst.msk [vmem:[%s3138_s23 + $0x8] sm:$0xff] %vm1313_vm2, %v1297_v36  ;;  %v3147_v38 = vadd.f32 %v1298_v37, %v1209_v29  ;;  %1324 = vrot.lane.b32.xlu1 %v1297_v36, %s2665_s20 }
 0x508   : > { %v1302_v39 = vpop.f32.mrf.mxu1 }
 0x509   : > { %v3150_v41 = vadd.f32 %v1302_v39, %v1205_v28 }
 0x50a   : > { %v1304_v42 = vpop.f32.mrf.mxu1 }
 0x50b   : > { %1316 = vst.msk [vmem:[%s3138_s23 + $0x10] sm:$0xff] %vm1313_vm2, %v3150_v41  ;;  %v1305_v43 = vadd.f32 %v1304_v42, %v1209_v29 }
 0x50c   : > { %v1308_v22 = vpop.f32.mrf.mxu1 }
 0x50d   : > { %v1340_v44 = vmax.f32 %v1305_v43, 0.0  ;;  %v3155_v45 = vadd.f32 %v1308_v22, %v1205_v28 }
 0x50e   : > { %v1310_v46 = vpop.f32.mrf.mxu1 }
 0x50f   : > { %1317 = vst.msk [vmem:[%s3138_s23 + $0x18] sm:$0xff] %vm1313_vm2, %v3155_v45  ;;  %v1311_v47 = vadd.f32 %v1310_v46, %v1209_v29  ;;  %2213 = vmatprep.mubr.msk.f32.mxu1 %vm1313_vm2, %v1340_v44 }
 0x511   : > { %v1341_v48 = vmax.f32 %v1311_v47, 0.0 }
 0x513   : > { %2214 = vmatmul.mubr.msk.f32.vlgmr.msra.gmra.mxu1 %vm1313_vm2, %v1341_v48 }
 0x579   : > { %v1325_v55 = vpop.permute.xlu1 %1324 }
 0x57a   : > { %1335 = vst.msk [vmem:[%s3164_s24 + $0x8] sm:$0xff] %vm1313_vm2, %v1325_v55  ;;  %v1350_v55 = vld [vmem:[%s3474_s6] sm:$0x3] }
 0x595   : > { %v2190_v56 = vpop.f32.mrf.mxu0 }
 0x596   : > { %v1178_v40 = vmul.f32 1.442695, %v2190_v56  ;;  %vm1173_vm5 = vcmp.gt.f32.partialorder %v2190_v56, 0.0 }
 0x597   : > { %v1153_v57 = vpop.f32.mrf.mxu0 }
 0x598   : > { %v1176_v58 = vmul.f32 1.442695, %v1153_v57  ;;  %2375 = vpow2.f32 %v1178_v40  ;;  %vm1172_vm3 = vcmp.gt.f32.partialorder %v1153_v57, 0.0 }
 0x59a   : > { %2377 = vpow2.f32 %v1176_v58 }
 0x59d   : > { %v2193_v1 = vpop.f32.mrf.mxu0 }
 0x59e   : > { %v1182_v2 = vmul.f32 1.442695, %v2193_v1  ;;  %vm1175_vm7 = vcmp.gt.f32.partialorder %v2193_v1, 0.0 }
 0x59f   : > { %v1163_v3 = vpop.f32.mrf.mxu0 }
 0x5a0   : > { %v1180_v8 = vmul.f32 1.442695, %v1163_v3  ;;  %2379 = vpow2.f32 %v1182_v2  ;;  %vm1174_vm6 = vcmp.gt.f32.partialorder %v1163_v3, 0.0  ;;  %v1359_v2 = vrot.slane %v1350_v55, %v1208_v27 }
 0x5a2   : > { %2381 = vpow2.f32 %v1180_v8 }
 0x5a5   : > { %v2376_v4 = vpop.eup %2375 }
 0x5a6   : > { %v2089_v11 = vadd.f32 -1.0, %v2376_v4 }
 0x5a7   : > { %v2378_v5 = vpop.eup %2377 }
 0x5a8   : > { %v2088_v9 = vadd.f32 -1.0, %v2378_v5  ;;  %v1189_v14 = vsel %vm1173_vm5, %v2190_v56, %v2089_v11  ;;  %v1355_v56 = vrot.slane %v1350_v55, %v2928_v18 }
 0x5aa   : > { %v1188_v12 = vsel %vm1172_vm3, %v1153_v57, %v2088_v9 }
 0x5ab   : > { %2096 = vmatmul.mubr.msk.f32.vlgmr.msra.gmra.mxu0 %vm757_vm4, %v1188_v12 }
 0x5ac   : > { %2195 = vmatpush3.msra.mxu0 %v3063_v59  ;;  %1444 = vmatprep.mubr.f32.mxu0 %v2664_v10 }
 0x5ad   : > { %2196 = vmatprep.subr.mxu0 %v3070_v60  ;;  %v2380_v13 = vpop.eup %2379 }
 0x5ae   : > { %2197 = vmatpush3.msra.mxu0 %v3070_v60  ;;  %v2091_v59 = vadd.f32 -1.0, %v2380_v13  ;;  %v1338_v60 = vmax.f32 %v3143_v33, 0.0 }
 0x5af   : > { %v2382_v15 = vpop.eup %2381  ;;  %2198 = vmatprep.subr.mxu0 %v3077_v6  ;;  %2097 = vmatmul.mubr.msk.f32.gmra.mxu0 %vm757_vm4, %v1189_v14 }
 0x5b0   : > { %v2090_v17 = vadd.f32 -1.0, %v2382_v15  ;;  %2199 = vmatpush3.msra.mxu0 %v3077_v6  ;;  %1450 = vmatprep.mubr.f32.mxu0 %v2664_v10  ;;  %v1191_v6 = vsel %vm1175_vm7, %v2193_v1, %v2091_v59 }
 0x5b1   : > { %2200 = vmatprep.subr.mxu0 %v3084_v7 }
 0x5b2   : > { %2201 = vmatpush3.msra.mxu0 %v3084_v7  ;;  %v1190_v19 = vsel %vm1174_vm6, %v1163_v3, %v2090_v17  ;;  %v1339_v7 = vmax.f32 %v3147_v38, 0.0 }
 0x5b3   : > { %2202 = vmatprep.subr.mxu0 %v3091_v61  ;;  %2098 = vmatmul.mubr.msk.f32.gmra.mxu0 %vm757_vm4, %v1190_v19 }
 0x5b4   : > { %2203 = vmatpush3.msra.mxu0 %v3091_v61  ;;  %1456 = vmatprep.mubr.f32.mxu0 %v2664_v10  ;;  %v3194_v10 = vstv %s2100_s22 }
 0x5b5   : > { %2204 = vmatprep.subr.mxu0 %v3098_v62 }
 0x5b6   : > { %2205 = vmatpush3.msra.mxu0 %v3098_v62 }
 0x5b7   : > { %2206 = vmatprep.subr.mxu0 %v3105_v63  ;;  %2099 = vmatmul.mubr.msk.f32.gmra.mxu0 %vm757_vm4, %v1191_v6 }
 0x5b8   : > { %2207 = vmatpush3.msra.mxu0 %v3105_v63  ;;  %2210 = vmatprep.mubr.msk.f32.mxu0 %vm1313_vm2, %v1338_v60 }
 0x5b9   : > { %2208 = vmatprep.subr.mxu0 %v3112_v0 }
 0x5ba   : > { %2209 = vmatpush3.msra.mxu0 %v3112_v0 }
 0x5bb   : > { %2211 = vmatmul.mubr.msk.f32.vlgmr.msra.gmra.mxu0 %vm1313_vm2, %v1339_v7 }
 0x5d3   : > { %v2215_v61 = vpop.f32.mrf.mxu1 }
 0x5d4   : > { %v1609_v62 = vadd.f32 %v2215_v61, %v3194_v10 }
 0x5d5   : > { %v1603_v20 = vpop.f32.mrf.mxu1 }
 0x5d6   : > { %v1619_v21 = vand.u32 2147483647, %v1609_v62  ;;  %v1604_v63 = vadd.f32 %v1603_v20, %v3194_v10  ;;  %v1615_v47 = vmax.f32 %v1609_v62, 0.0 }
 0x5d8   : > { %v1623_v23 = vsub.f32 0.0, %v1619_v21  ;;  %v1618_v25 = vand.u32 2147483647, %v1604_v63  ;;  %v1614_v51 = vmax.f32 %v1604_v63, 0.0 }
 0x5da   : > { %v1630_v26 = vmul.f32 1.442695, %v1623_v23  ;;  %v1622_v28 = vsub.f32 0.0, %v1618_v25 }
 0x5dc   : > { %2383 = vpow2.f32 %v1630_v26  ;;  %v1628_v0 = vmul.f32 1.442695, %v1622_v28 }
 0x5de   : > { %2385 = vpow2.f32 %v1628_v0 }
 0x5e9   : > { %v2384_v29 = vpop.eup %2383 }
 0x5ea   : > { %v1659_v30 = vadd.f32 1.0, %v2384_v29  ;;  %v1662_v34 = vmul.f32 -0.5, %v2384_v29  ;;  %v1665_v38 = vand.u32 2147483647, %v2384_v29 }
 0x5eb   : > { %v2386_v32 = vpop.eup %2385 }
 0x5ec   : > { %2387 = vlog2.f32 %v1659_v30  ;;  %v1650_v33 = vadd.f32 1.0, %v2386_v32  ;;  %v1653_v36 = vmul.f32 -0.5, %v2386_v32  ;;  %v1663_v37 = vadd.f32 1.0, %v1662_v34 }
 0x5ed   : > { %v1656_v43 = vand.u32 2147483647, %v2386_v32  ;;  %vm1666_vm4 = vcmp.lt.f32.partialorder %v1665_v38, 0.0004427343 }
 0x5ee   : > { %2389 = vlog2.f32 %v1650_v33  ;;  %v1654_v39 = vadd.f32 1.0, %v1653_v36  ;;  %v1664_v44 = vmul.f32 %v2384_v29, %v1663_v37 }
 0x5ef   : > { %vm1657_vm8 = vcmp.lt.f32.partialorder %v1656_v43, 0.0004427343 }
 0x5f0   : > { %v1655_v50 = vmul.f32 %v2386_v32, %v1654_v39 }
 0x5f9   : > { %v2388_v42 = vpop.eup %2387 }
 0x5fa   : > { %v1661_v22 = vmul.f32 0.6931472, %v2388_v42 }
 0x5fb   : > { %v2390_v46 = vpop.eup %2389 }
 0x5fc   : > { %v1667_v48 = vsel %vm1666_vm4, %v1664_v44, %v1661_v22  ;;  %v1652_v49 = vmul.f32 0.6931472, %v2390_v46 }
 0x5fd   : > { %v3200_v24 = vadd.f32 %v1667_v48, %v1615_v47 }
 0x5fe   : > { %v1658_v52 = vsel %vm1657_vm8, %v1655_v50, %v1652_v49 }
 0x5ff   : > { %v1675_v35 = vsub.f32 0.0, %v3200_v24  ;;  %v3208_v53 = vadd.f32 %v1658_v52, %v1614_v51 }
 0x601   : > { %1680 = vst.msk [vmem:[%s3205_s19 + $0x18] sm:$0xff] %vm1676_vm9, %v1675_v35  ;;  %v1674_v54 = vsub.f32 0.0, %v3208_v53 }
 0x603   : > { %1679 = vst.msk [vmem:[%s3205_s19 + $0x10] sm:$0xff] %vm1676_vm9, %v1674_v54 }
 0x66b   : > { %v1440_v40 = vpop.f32.mrf.mxu0 }
 0x66c   : > { %v1441_v57 = vadd.f32 %v1440_v40, %v1355_v56 }
 0x66d   : > { %v1442_v58 = vpop.f32.mrf.mxu0 }
 0x66e   : > { %1464 = vst.msk [vmem:[%s3224_s8] sm:$0xff] %vm1463_vm10, %v1441_v57  ;;  %1476 = vrot.lane.b32.xlu0 %v1441_v57, %s2666_s26  ;;  %v1443_v4 = vadd.f32 %v1442_v58, %v1359_v2 }
 0x66f   : > { %v1446_v1 = vpop.f32.mrf.mxu0 }
 0x670   : > { %v1447_v18 = vadd.f32 %v1446_v1, %v1355_v56 }
 0x671   : > { %v1448_v3 = vpop.f32.mrf.mxu0 }
 0x672   : > { %1465 = vst.msk [vmem:[%s3224_s8 + $0x8] sm:$0xff] %vm1463_vm10, %v1447_v18  ;;  %1322 = vrot.lane.b32.xlu0 %v3135_v31, %s2665_s20  ;;  %v1449_v14 = vadd.f32 %v1448_v3, %v1359_v2 }
 0x673   : > { %v1452_v8 = vpop.f32.mrf.mxu0 }
 0x674   : > { %v1453_v5 = vadd.f32 %v1452_v8, %v1355_v56 }
 0x675   : > { %v1454_v9 = vpop.f32.mrf.mxu0 }
 0x676   : > { %1466 = vst.msk [vmem:[%s3224_s8 + $0x10] sm:$0xff] %vm1463_vm10, %v1453_v5  ;;  %v1455_v11 = vadd.f32 %v1454_v9, %v1359_v2  ;;  %1478 = vrot.lane.b32.xlu0 %v1443_v4, %s2666_s26 }
 0x677   : > { %v1458_v12 = vpop.f32.mrf.mxu0 }
 0x678   : > { %v1459_v16 = vadd.f32 %v1458_v12, %v1355_v56  ;;  %1486 = vrot.lane.b32.xlu1 %v1455_v11, %s2666_s26 }
 0x679   : > { %v1460_v27 = vpop.f32.mrf.mxu0 }
 0x67a   : > { %1467 = vst.msk [vmem:[%s3224_s8 + $0x18] sm:$0xff] %vm1463_vm10, %v1459_v16  ;;  %v1461_v13 = vadd.f32 %v1460_v27, %v1359_v2  ;;  %1480 = vrot.lane.b32.xlu0 %v1447_v18, %s2666_s26 }
 0x67b   : > { %v2212_v31 = vpop.f32.mrf.mxu0 }
 0x67c   : > { %v1599_v15 = vadd.f32 %v2212_v31, %v3194_v10  ;;  %1490 = vrot.lane.b32.xlu1 %v1461_v13, %s2666_s26 }
 0x67d   : > { %v1593_v17 = vpop.f32.mrf.mxu0 }
 0x67e   : > { %v1617_v59 = vand.u32 2147483647, %v1599_v15  ;;  %v1594_v19 = vadd.f32 %v1593_v17, %v3194_v10  ;;  %1482 = vrot.lane.b32.xlu0 %v1449_v14, %s2666_s26  ;;  %v1613_v33 = vmax.f32 %v1599_v15, 0.0 }
 0x680   : > { %v1621_v60 = vsub.f32 0.0, %v1617_v59  ;;  %v1616_v6 = vand.u32 2147483647, %v1594_v19  ;;  %1328 = vrot.lane.b32.xlu1 %v3155_v45, %s2665_s20  ;;  %v1612_v39 = vmax.f32 %v1594_v19, 0.0 }
 0x682   : > { %v1626_v7 = vmul.f32 1.442695, %v1621_v60  ;;  %v1620_v61 = vsub.f32 0.0, %v1616_v6  ;;  %1484 = vrot.lane.b32.xlu0 %v1453_v5, %s2666_s26 }
 0x684   : > { %2391 = vpow2.f32 %v1626_v7  ;;  %v1624_v62 = vmul.f32 1.442695, %v1620_v61 }
 0x686   : > { %2393 = vpow2.f32 %v1624_v62  ;;  %1326 = vrot.lane.b32.xlu0 %v3150_v41, %s2665_s20  ;;  %s3258_s20 = sshll.u32 %s2770_s17, 9 }
 0x687   : > { %s3266_s23 = scalar_lea.hbm %s3477_s9, %s3258_s20 }
 0x68a   : > { %1488 = vrot.lane.b32.xlu0 %v1459_v16, %s2666_s26 }
 0x691   : > { %v2392_v10 = vpop.eup %2391 }
 0x692   : > { %v1641_v20 = vadd.f32 1.0, %v2392_v10  ;;  %v1644_v23 = vmul.f32 -0.5, %v2392_v10  ;;  %v1647_v26 = vand.u32 2147483647, %v2392_v10 }
 0x693   : > { %v2394_v21 = vpop.eup %2393 }
 0x694   : > { %2395 = vlog2.f32 %v1641_v20  ;;  %v1632_v63 = vadd.f32 1.0, %v2394_v21  ;;  %v1635_v45 = vmul.f32 -0.5, %v2394_v21  ;;  %v1645_v25 = vadd.f32 1.0, %v1644_v23 }
 0x695   : > { %v1638_v29 = vand.u32 2147483647, %v2394_v21  ;;  %vm1648_vm11 = vcmp.lt.f32.partialorder %v1647_v26, 0.0004427343 }
 0x696   : > { %2397 = vlog2.f32 %v1632_v63  ;;  %v1636_v28 = vadd.f32 1.0, %v1635_v45  ;;  %v1646_v32 = vmul.f32 %v2392_v10, %v1645_v25 }
 0x697   : > { %vm1639_vm12 = vcmp.lt.f32.partialorder %v1638_v29, 0.0004427343 }
 0x698   : > { %v1637_v37 = vmul.f32 %v2394_v21, %v1636_v28 }
 0x6a1   : > { %v2396_v0 = vpop.eup %2395 }
 0x6a2   : > { %v1643_v30 = vmul.f32 0.6931472, %v2396_v0 }
 0x6a3   : > { %v2398_v41 = vpop.eup %2397 }
 0x6a4   : > { %v1649_v34 = vsel %vm1648_vm11, %v1646_v32, %v1643_v30  ;;  %v1634_v36 = vmul.f32 0.6931472, %v2398_v41 }
 0x6a5   : > { %v1669_v38 = vadd.f32 %v1649_v34, %v1613_v33 }
 0x6a6   : > { %v1640_v42 = vsel %vm1639_vm12, %v1637_v37, %v1634_v36 }
 0x6a7   : > { %v1673_v43 = vsub.f32 0.0, %v1669_v38  ;;  %v1668_v22 = vadd.f32 %v1640_v42, %v1612_v39 }
 0x6a9   : > { %1678 = vst.msk [vmem:[%s3205_s19 + $0x8] sm:$0xff] %vm1676_vm9, %v1673_v43  ;;  %v1672_v44 = vsub.f32 0.0, %v1668_v22 }
 0x6ab   : > { %1681 = vxpose.xlu0.b32.start [1/4] (short) (narrow) %v1672_v44, 8  ;;  %1677 = vst.msk [vmem:[%s3205_s19] sm:$0xff] %vm1676_vm9, %v1672_v44 }
 0x6ac   : > { %2481 = shalt.err (!%p2478_p10)
}
 0x6ad   : > { %s2482_s19 = scalar_lea.hbm %s3266_s23, 512  ;;  %s2486_s5 = scalar_lea.hbm %s3477_s9, 1024 }
 0x6ae   : > { %p2483_p0 = scmp.ne.s32.totalorder %s3266_s23, %s2482_s19  ;;  %p2487_p3 = scmp.lt.s32.totalorder %s3266_s23, %s3477_s9 }
 0x6af   : > { %p2488_p11 = scmp.lt.s32.totalorder %s2486_s5, %s2482_s19 }
 0x6b0   : > { %p2484_p4 = pnand %p2483_p0, %p3529_p6 }
 0x6b1   : > { %p2489_p1 = por %p2488_p11, %p2487_p3 }
 0x6b2   : > { %p2485_p8 = pneg %p2484_p4 }
 0x6b4   : > { %p2490_p2 = pnand %p2489_p1, %p2485_p8 }
 0x6b6   : > { %2493 = shalt.err (!%p2490_p2)
}
 0x6b7   : > { %s3496_s13 = smov 128   ;;  %s3498_s21 = smov 8   ;;  %1682 = vxpose.xlu0.b32.cont [2/4] (short) (narrow) %v1673_v43, 8  ;;  %vm1492_vm13 = vcmask 490496  }
 0x6b8   : > { %s3530_s18 = scalar_lea.sflag [#allocation4], %s2869_s15  ;;  %s1785_s16 = sshll.u32 %s3224_s8, 4  ;;  %s3328_s16 = int_to_ptr.vmem [resolvable:$true] %s1785_s16 }
 0x6b9   : > { %2242 = dma.vmem_to_hbm [thread:$0]  (%p3529_p6), %s3255_s28, 512, %s3266_s23, %s3530_s18, %s3496_s13, %s3496_s13, %s3498_s21  }
 0x6ba   : > { %s3302_s28 = scalar_lea.vmem [#allocation13], %s3130_s25  ;;  %s1769_s25 = sshll.u32 %s3164_s24, 4  ;;  %s3317_s25 = int_to_ptr.vmem [resolvable:$true] %s1769_s25 }
 0x6bb   : > { %1683 = vxpose.xlu0.b32.cont [3/4] (short) (narrow) %v1674_v54, 8  ;;  %s3500_s23 = sand.u32 1, %s2770_s17   ;;  %s1801_s19 = sshll.u32 %s3302_s28, 4  ;;  %s3336_s19 = int_to_ptr.vmem [resolvable:$true] %s1801_s19 }
 0x6bc   : > { %s3326_s5 = scalar_lea.hbm %s3478_s10, %s3258_s20  ;;  %s3334_s18 = scalar_lea.hbm %s3479_s11, %s3258_s20 }
 0x6bd   : > { %s3342_s13 = scalar_lea.sflag [#allocation11], %s3500_s23  ;;  %s2494_s21 = scalar_lea.vmem %s3317_s25, 512 }
 0x6be   : > { %p2495_p12 = scmp.ne.s32.totalorder %s3317_s25, %s2494_s21  ;;  %s2670_s26 = smov [#allocation10]  }
 0x6bf   : > { %1684 = vxpose.xlu0.b32.end [4/4] (short) (narrow) %v1675_v35, 8  ;;  %s2498_s22 = sshll.u32 %s2670_s26, 4  ;;  %s2499_s22 = int_to_ptr.vmem [resolvable:$false] %s2498_s22 }
 0x6c0   : > { %p2496_p7 = pnand %p2495_p12, %p3529_p6  ;;  %s2500_s0 = scalar_lea.vmem %s2499_s22, 1024 }
 0x6c1   : > { %p2501_p13 = scmp.lt.s32.totalorder %s3317_s25, %s2499_s22  ;;  %p2502_p5 = scmp.lt.s32.totalorder %s2500_s0, %s2494_s21 }
 0x6c2   : > { %p2497_p9 = pneg %p2496_p7 }
 0x6c3   : > { %p2503_p10 = por %p2502_p5, %p2501_p13 }
 0x6c5   : > { %p2504_p0 = pnand %p2503_p10, %p2497_p9 }
 0x6e0   : > { %v1477_v46 = vpop.permute.xlu0 %1476 }
 0x6e4   : > { %v1323_v47 = vpop.permute.xlu0 %1322 }
 0x6e5   : > { %1334 = vst.msk [vmem:[%s3164_s24] sm:$0xff] %vm1313_vm2, %v1323_v47 }
 0x6e8   : > { %v1479_v48 = vpop.permute.xlu0 %1478 }
 0x6e9   : > { %v1493_v49 = vsel %vm1492_vm13, %v1477_v46, %v1479_v48 }
 0x6ea   : > { %1501 = vst.msk [vmem:[%s3302_s28] sm:$0xff] %vm1463_vm10, %v1493_v49  ;;  %v1487_v50 = vpop.permute.xlu1 %1486 }
 0x6ec   : > { %v1481_v24 = vpop.permute.xlu0 %1480 }
 0x6ee   : > { %v3306_v51 = vpop.permute.xlu1 %1490 }
 0x6f0   : > { %v1483_v52 = vpop.permute.xlu0 %1482 }
 0x6f1   : > { %v1494_v35 = vsel %vm1492_vm13, %v1481_v24, %v1483_v52 }
 0x6f2   : > { %1502 = vst.msk [vmem:[%s3302_s28 + $0x8] sm:$0xff] %vm1463_vm10, %v1494_v35  ;;  %v1329_v53 = vpop.permute.xlu1 %1328 }
 0x6f3   : > { %1337 = vst.msk [vmem:[%s3164_s24 + $0x18] sm:$0xff] %vm1313_vm2, %v1329_v53 }
 0x6f4   : > { %v1485_v54 = vpop.permute.xlu0 %1484 }
 0x6f5   : > { %v1495_v55 = vsel %vm1492_vm13, %v1485_v54, %v1487_v50 }
 0x6f6   : > { %1503 = vst.msk [vmem:[%s3302_s28 + $0x10] sm:$0xff] %vm1463_vm10, %v1495_v55 }
 0x6f8   : > { %v1327_v56 = vpop.permute.xlu0 %1326 }
 0x6f9   : > { %1336 = vst.msk [vmem:[%s3164_s24 + $0x10] sm:$0xff] %vm1313_vm2, %v1327_v56 }
 0x6fa   : > { %2507 = shalt.err (!%p2504_p0)
}
 0x6fb   : > { %s2508_s24 = scalar_lea.hbm %s3326_s5, 512  ;;  %s2512_s26 = scalar_lea.hbm %s3478_s10, 1024 }
 0x6fc   : > { %p2509_p4 = scmp.ne.s32.totalorder %s3326_s5, %s2508_s24  ;;  %p2513_p11 = scmp.lt.s32.totalorder %s3326_s5, %s3478_s10 }
 0x6fd   : > { %p2514_p1 = scmp.lt.s32.totalorder %s2512_s26, %s2508_s24 }
 0x6fe   : > { %p2510_p8 = pnand %p2509_p4, %p3529_p6 }
 0x6ff   : > { %p2515_p2 = por %p2514_p1, %p2513_p11 }
 0x700   : > { %p2511_p3 = pneg %p2510_p8 }
 0x702   : > { %p2516_p12 = pnand %p2515_p2, %p2511_p3 }
 0x704   : > { %2519 = shalt.err (!%p2516_p12)
}
 0x705   : > { %s3531_s0 = smov 8   ;;  %s3532_s21 = smov 128  }
 0x706   : > { %2243 = dma.vmem_to_hbm [thread:$0]  (%p3529_p6), %s3317_s25, 512, %s3326_s5, %s3342_s13, %s3532_s21, %s3532_s21, %s3531_s0  }
 0x707   : > { %s2520_s22 = scalar_lea.vmem %s3328_s16, 512  ;;  %s2671_s1 = smov [#allocation12]  }
 0x708   : > { %p2521_p7 = scmp.ne.s32.totalorder %s3328_s16, %s2520_s22  ;;  %s2524_s23 = sshll.u32 %s2671_s1, 4  ;;  %s2525_s23 = int_to_ptr.vmem [resolvable:$false] %s2524_s23 }
 0x709   : > { %s2526_s24 = scalar_lea.vmem %s2525_s23, 1024  ;;  %p2527_p5 = scmp.lt.s32.totalorder %s3328_s16, %s2525_s23 }
 0x70a   : > { %p2522_p9 = pnand %p2521_p7, %p3529_p6  ;;  %p2528_p10 = scmp.lt.s32.totalorder %s2526_s24, %s2520_s22 }
 0x70c   : > { %p2523_p13 = pneg %p2522_p9  ;;  %p2529_p0 = por %p2528_p10, %p2527_p5 }
 0x70e   : > { %p2530_p4 = pnand %p2529_p0, %p2523_p13 }
 0x710   : > { %2533 = shalt.err (!%p2530_p4)
}
 0x711   : > { %s2534_s29 = scalar_lea.hbm %s3334_s18, 512  ;;  %s2538_s8 = scalar_lea.hbm %s3479_s11, 1024 }
 0x712   : > { %p2535_p8 = scmp.ne.s32.totalorder %s3334_s18, %s2534_s29  ;;  %p2539_p1 = scmp.lt.s32.totalorder %s3334_s18, %s3479_s11 }
 0x713   : > { %p2540_p2 = scmp.lt.s32.totalorder %s2538_s8, %s2534_s29 }
 0x714   : > { %p2536_p3 = pnand %p2535_p8, %p3529_p6 }
 0x715   : > { %p2541_p12 = por %p2540_p2, %p2539_p1 }
 0x716   : > { %p2537_p11 = pneg %p2536_p3 }
 0x718   : > { %p2542_p7 = pnand %p2541_p12, %p2537_p11 }
 0x71a   : > { %2545 = shalt.err (!%p2542_p7)
}
 0x71b   : > { %2244 = dma.vmem_to_hbm [thread:$0]  (%p3529_p6), %s3328_s16, 512, %s3334_s18, %s3342_s13, %s3532_s21, %s3532_s21, %s3531_s0   ;;  %v1489_v40 = vpop.permute.xlu0 %1488 }
 0x71c   : > { %s3396_s24 = scalar_lea.hbm %s3480_s12, %s3258_s20  ;;  %v1496_v57 = vsel %vm1492_vm13, %v1489_v40, %v3306_v51  ;;  %s3533_s29 = sand.u32 1, %s2770_s17  }
 0x71d   : > { %1504 = vst.msk [vmem:[%s3302_s28 + $0x18] sm:$0xff] %vm1463_vm10, %v1496_v57  ;;  %s3404_s25 = scalar_lea.sflag [#allocation14], %s3533_s29  ;;  %s2546_s5 = scalar_lea.vmem %s3336_s19, 512 }
 0x71e   : > { %p2547_p9 = scmp.ne.s32.totalorder %s3336_s19, %s2546_s5  ;;  %s2672_s13 = smov [#allocation13]  }
 0x71f   : > { %s2550_s16 = sshll.u32 %s2672_s13, 4  ;;  %s2551_s16 = int_to_ptr.vmem [resolvable:$false] %s2550_s16 }
 0x720   : > { %p2548_p13 = pnand %p2547_p9, %p3529_p6  ;;  %s2552_s18 = scalar_lea.vmem %s2551_s16, 1024 }
 0x721   : > { %p2553_p10 = scmp.lt.s32.totalorder %s3336_s19, %s2551_s16  ;;  %p2554_p0 = scmp.lt.s32.totalorder %s2552_s18, %s2546_s5 }
 0x722   : > { %p2549_p5 = pneg %p2548_p13 }
 0x723   : > { %p2555_p4 = por %p2554_p0, %p2553_p10 }
 0x725   : > { %p2556_p8 = pnand %p2555_p4, %p2549_p5 }
 0x727   : > { %2559 = shalt.err (!%p2556_p8)
}
 0x728   : > { %s2560_s20 = scalar_lea.hbm %s3396_s24, 512  ;;  %s2564_s26 = scalar_lea.hbm %s3480_s12, 1024 }
 0x729   : > { %p2561_p3 = scmp.ne.s32.totalorder %s3396_s24, %s2560_s20  ;;  %p2565_p2 = scmp.lt.s32.totalorder %s3396_s24, %s3480_s12 }
 0x72a   : > { %p2566_p12 = scmp.lt.s32.totalorder %s2564_s26, %s2560_s20 }
 0x72b   : > { %p2562_p11 = pnand %p2561_p3, %p3529_p6 }
 0x72c   : > { %p2567_p7 = por %p2566_p12, %p2565_p2 }
 0x72d   : > { %p2563_p1 = pneg %p2562_p11 }
 0x72f   : > { %p2568_p9 = pnand %p2567_p7, %p2563_p1 }
 0x731   : > { %2571 = shalt.err (!%p2568_p9)
}
 0x732   : > { %2245 = dma.vmem_to_hbm [thread:$0]  (%p3529_p6), %s3336_s19, 512, %s3396_s24, %s3404_s25, %s3532_s21, %s3532_s21, %s3531_s0   ;;  %vm1713_vm14 = vcmask 253952   ;;  %v1697_v58 = vpop.trf.xlu0 }
 0x733   : > { %s545_s23 = scalar_lea.vmem [#allocation15], %s2869_s15  ;;  %s2117_s5 = sshll.u32 %s2770_s17, 4 }
 0x734   : > { %s1817_s29 = sshll.u32 %s545_s23, 4  ;;  %s3534_s18 = sld [smem:[#allocation32_spill]]  ;;  %1714 = vst.msk [vmem:[%s545_s23] sm:$0x1] %vm1713_vm14, %v1697_v58  ;;  %s1818_s29 = int_to_ptr.vmem [resolvable:$true] %s1817_s29 }
 0x735   : > { %s2572_s28 = scalar_lea.vmem %s1818_s29, 16  ;;  %s2673_s8 = smov [#allocation15]  }
 0x736   : > { %p2573_p13 = scmp.ne.s32.totalorder %s1818_s29, %s2572_s28  ;;  %s2576_s26 = sshll.u32 %s2673_s8, 4  ;;  %s2577_s26 = int_to_ptr.vmem [resolvable:$false] %s2576_s26 }
 0x737   : > { %s2578_s19 = scalar_lea.vmem %s2577_s26, 32  ;;  %p2579_p0 = scmp.lt.s32.totalorder %s1818_s29, %s2577_s26 }
 0x738   : > { %p2574_p5 = pnand %p2573_p13, %p3529_p6  ;;  %p2580_p4 = scmp.lt.s32.totalorder %s2578_s19, %s2572_s28 }
 0x73a   : > { %s1815_s20 = scalar_lea.hbm %s3534_s18, %s2117_s5  ;;  %p2575_p10 = pneg %p2574_p5 }
 0x73b   : > { %p2581_p8 = por %p2580_p4, %p2579_p0 }
 0x73d   : > { %p2582_p3 = pnand %p2581_p8, %p2575_p10 }
 0x73f   : > { %2585 = shalt.err (!%p2582_p3)
}
 0x740   : > { %s2586_s17 = scalar_lea.hbm %s1815_s20, 16  ;;  %s2590_s21 = scalar_lea.hbm %s3534_s18, 32 }
 0x741   : > { %p2587_p11 = scmp.ne.s32.totalorder %s1815_s20, %s2586_s17  ;;  %p2591_p12 = scmp.lt.s32.totalorder %s1815_s20, %s3534_s18 }
 0x742   : > { %p2592_p7 = scmp.lt.s32.totalorder %s2590_s21, %s2586_s17 }
 0x743   : > { %p2588_p1 = pnand %p2587_p11, %p3529_p6 }
 0x744   : > { %p2593_p9 = por %p2592_p7, %p2591_p12 }
 0x745   : > { %p2589_p2 = pneg %p2588_p1 }
 0x747   : > { %p2594_p13 = pnand %p2593_p9, %p2589_p2 }
 0x749   : > { %2597 = shalt.err (!%p2594_p13)
}
 0x74a   : > { %2246 = dma.vmem_to_hbm [thread:$0]  (%p3529_p6), %s1818_s29, 16, %s1815_s20, %s3404_s25  }
 0x74b PF: > { %s3535_s22 = sld [smem:[#allocation22_spill]] }
 0x74c   : > { %s3536_s23 = sld [smem:[#allocation25_spill]] }
 0x74d   : > { %s3537_s5 = sld [smem:[#allocation24_spill]] }
 0x751   : > { %s1832_s13 = sand.u32 1, %s3535_s22  }
 0x752   : > { %p3538_p5 = scmp.ne.s32.totalorder %s3536_s23, 0  ;;  %s1833_s16 = scalar_lea.sflag [#allocation4], %s1832_s13 }
 0x753   : > { %p3539_p10 = scmp.ge.s32.totalorder %s3537_s5, 2 }
 0x755   : > { %p2264_p0 = pnand %p3539_p10, %p3538_p5 }
 0x757   : > { %p2265_p4 = pneg %p2264_p0 }
 0x759   : > { %2627 = dma.done.wait (%p2265_p4), %s1833_s16, 512  }
 0x75a   : > { %2629 = vsyncadd (%p2265_p4), %s1833_s16, 4294966784  ;;  %s3540_s28 = sadd.s32 4294967294, %s3537_s5  }
 0x75b   : > { %s1841_s8 = sand.u32 1, %s3540_s28  }
 0x75c   : > { %s1842_s26 = scalar_lea.sflag [#allocation11], %s1841_s8 }
 0x75d   : > { %2631 = dma.done.wait (%p2265_p4), %s1842_s26, 1024  }
 0x75e   : > { %2633 = vsyncadd (%p2265_p4), %s1842_s26, 4294966272  ;;  %s1860_s27 = scalar_lea.sflag [#allocation14], %s1841_s8 }
 0x75f   : > { %2635 = dma.done.wait (%p2265_p4), %s1860_s27, 528  }
 0x760   : > { %2637 = vsyncadd (%p2265_p4), %s1860_s27, 4294966768  ;;  %s3541_s16 = sld [smem:[#allocation26_spill]]  ;;  %s3544_s29 = smov %s2644_s30 }
 0x761   : > { %s3542_s25 = sld [smem:[#allocation23_spill]] }
 0x762   : > { %s3543_s15 = sld [smem:[#allocation27_spill]] }
 0x766   : > { %p36_p6 = scmp.ge.s32.totalorder %s3541_s16, 4  }
 0x767   : > { %s3545_s30 = smov %s3542_s25 }
 0x768   :  { %38 = sbr.rel (!%p36_p6) target bundleno = 17 (0x11), region = 186 }
 0x76d   :  { %1881 = vsyncpa [#allocation3], 1 }
 0x76e   :  { %1883 = vsyncpa [#allocation3 + $0x1], 1 }
 0x76f   :  { %1884 = vsyncpa [#allocation7], 1 }
 0x770   :  { %1885 = vsyncpa [#allocation4], 1 }
 0x771   :  { %1887 = vsyncpa [#allocation4 + $0x1], 1 }
 0x772   :  { %1888 = vsyncpa [#allocation11], 1 }
 0x773   :  { %1890 = vsyncpa [#allocation11 + $0x1], 1 }
 0x774   :  { %1891 = vsyncpa [#allocation14], 1 }
 0x775   :  { %1893 = vsyncpa [#allocation14 + $0x1], 1 }
 0x776   :  { %1894 = vsyncpa [#allocation5], 1 }
 0x777   :  { %1896 = vsyncpa [#allocation5 + $0x1], 1 }

</bundles_post_ra>
